<compile_context>
chip_gen: v6e
topology: v6e:2x2x1
jax: 0.10.0
libtpu: 0.0.40
codegen_flags: <defaults>
</compile_context>

<pallas_src>
import random

import jax
import jax.numpy as jnp
from jax.experimental import pallas as pl
from jax.experimental.pallas import tpu as pltpu


# --------------------------- fused seq2seq kernel ----------------------------

def _seq2seq_kernel(enc_xg_ref, enc_wh_ref, tok_sel_ref, dec_embwx_ref,
                    dec_wh_ref, dec_b_ref, fc_w_ref, fc_b_ref, out_ref):
    """One invocation: encoder recurrence, then teacher-forced decoder loop.

    enc_xg_ref:    [Tsrc, B, 4H] f32   precomputed x@W_x + (b_ih+b_hh) per step
    enc_wh_ref:    [H, 4H]      bf16   encoder recurrent weights
    tok_sel_ref:   [Ttgt, B, 1] int32  teacher token per step, or -1 => use argmax
    dec_embwx_ref: [V, 4H]      bf16   decoder (embedding @ W_x) folded matrix
    dec_wh_ref:    [H, 4H]      bf16   decoder recurrent weights
    dec_b_ref:     [1, 4H]      f32    decoder bias (b_ih + b_hh)
    fc_w_ref:      [H, Opad]    bf16   output head (vocab padded to 128 lanes)
    fc_b_ref:      [1, Opad]    f32    head bias (-1e30 in padded lanes)
    out_ref:       [Ttgt, B, Opad] f32 logits, row 0 is zeros (reference semantics)
    """
    Tsrc, B, H4 = enc_xg_ref.shape
    H = H4 // 4
    Ttgt = out_ref.shape[0]
    V = dec_embwx_ref.shape[0]
    Opad = out_ref.shape[2]

    def lstm_update(gates, c):
        i = jax.nn.sigmoid(gates[:, 0 * H:1 * H])
        f = jax.nn.sigmoid(gates[:, 1 * H:2 * H])
        g = jnp.tanh(gates[:, 2 * H:3 * H])
        o = jax.nn.sigmoid(gates[:, 3 * H:4 * H])
        c_new = f * c + i * g
        h_new = o * jnp.tanh(c_new)
        return h_new, c_new

    # ---------------- encoder: only the sequential part (h @ W_hh) is in the loop
    def enc_step(t, carry):
        h, c = carry
        gates = enc_xg_ref[t] + jnp.dot(h.astype(jnp.bfloat16), enc_wh_ref[...],
                                        preferred_element_type=jnp.float32)
        return lstm_update(gates, c)

    h0 = jnp.zeros((B, H), jnp.float32)
    c0 = jnp.zeros((B, H), jnp.float32)
    h, c = jax.lax.fori_loop(0, Tsrc, enc_step, (h0, c0), unroll=True)

    # Reference semantics: outputs[:, 0, :] == 0.
    out_ref[0] = jnp.zeros((B, Opad), jnp.float32)

    oh_col = jax.lax.broadcasted_iota(jnp.int32, (B, V), 1)
    pcol = jax.lax.broadcasted_iota(jnp.int32, (B, Opad), 1)
    # Initial decoder input: one-hot of target[:, 0] (tok_sel[0] is always >= 0).
    oh = (oh_col == tok_sel_ref[0]).astype(jnp.bfloat16)        # [B, V] bf16

    # ---------------- decoder: embedding + input projection folded into one dot
    def dec_step(t, carry):
        h, c, oh = carry
        gates = (jnp.dot(oh, dec_embwx_ref[...], preferred_element_type=jnp.float32)
                 + jnp.dot(h.astype(jnp.bfloat16), dec_wh_ref[...],
                           preferred_element_type=jnp.float32)
                 + dec_b_ref[...])                               # [B, 4H] f32
        h_new, c_new = lstm_update(gates, c)

        # fc head straight from the VMEM-resident hidden state (lane-dense store).
        pred = (jnp.dot(h_new.astype(jnp.bfloat16), fc_w_ref[...],
                        preferred_element_type=jnp.float32) + fc_b_ref[...])
        out_ref[t] = pred                                        # [B, Opad] f32

        # argmax (first max index) via max + iota + min; padded lanes hold -1e30
        # from fc_b so they can never win.
        m = jnp.max(pred, axis=1, keepdims=True)
        top1 = jnp.min(jnp.where(pred == m, pcol, Opad), axis=1, keepdims=True)

        # Teacher forcing: tok_sel[t] >= 0 -> use the teacher token, else argmax.
        sel = tok_sel_ref[t]                                     # [B, 1] int32
        nxt = jnp.where(sel >= 0, sel, top1)                     # [B, 1] int32
        oh_new = (oh_col == nxt).astype(jnp.bfloat16)
        return (h_new, c_new, oh_new)

    jax.lax.fori_loop(1, Ttgt, dec_step, (h, c, oh), unroll=True)


def _run_fused_seq2seq(enc_xg, enc_wh, tok_sel, dec_embwx, dec_wh, dec_b,
                       fc_w, fc_b):
    Ttgt, B, _ = tok_sel.shape
    Opad = fc_w.shape[1]

    args = (enc_xg, enc_wh, tok_sel, dec_embwx, dec_wh, dec_b, fc_w, fc_b)
    io_bytes = sum(int(a.size) * a.dtype.itemsize for a in args)
    io_bytes += Ttgt * B * Opad * 4                              # output buffer
    # Scoped-VMEM limit sized from the resident buffers (generous 2x for layout
    # padding), floored at 32 MiB and capped at v7x's 64 MiB physical VMEM.
    vmem_limit = int(min(64 << 20, max(32 << 20, 2 * io_bytes)))

    return pl.pallas_call(
        _seq2seq_kernel,
        out_shape=jax.ShapeDtypeStruct((Ttgt, B, Opad), jnp.float32),
        in_specs=[pl.BlockSpec(memory_space=pltpu.MemorySpace.VMEM)] * len(args),
        out_specs=pl.BlockSpec(memory_space=pltpu.MemorySpace.VMEM),
        compiler_params=pltpu.CompilerParams(vmem_limit_bytes=vmem_limit),
    )(*args)
    # TODO(synk): at production sizes (H~1024, vocab~32k) the folded [V,4H] and
    # [H,Vocab] matrices no longer fit VMEM: tile fc_w along the vocab dim with a
    # running (max, argmax), replace the one-hot matmul with a DMA gather from
    # HBM, and add a "parallel" batch axis for v7x's second TensorCore.


# ------------------------- parameter setup (glue) ----------------------------

def init_params(key, input_dim, embedding_dim, hidden_dim, output_dim, pad_idx=0):
    ks = jax.random.split(key, 12)
    k = 1.0 / float(hidden_dim) ** 0.5

    def unif(kk, shape):
        return jax.random.uniform(kk, shape, jnp.float32, -k, k)

    emb = jax.random.normal(ks[0], (input_dim, embedding_dim), jnp.float32)
    emb = emb.at[pad_idx].set(0.0)                               # padding_idx row
    dec_emb = jax.random.normal(ks[1], (output_dim, embedding_dim), jnp.float32)
    dec_emb = dec_emb.at[pad_idx].set(0.0)

    # LSTM weights, transposed to [in_features, 4H]; biases are b_ih + b_hh
    # (two independent uniform draws, summed -- matches PyTorch's effective bias).
    enc_wx = unif(ks[2], (embedding_dim, 4 * hidden_dim))
    enc_wh = unif(ks[3], (hidden_dim, 4 * hidden_dim))
    enc_b = unif(ks[4], (1, 4 * hidden_dim)) + unif(ks[5], (1, 4 * hidden_dim))

    dec_wx = unif(ks[6], (embedding_dim, 4 * hidden_dim))
    dec_wh = unif(ks[7], (hidden_dim, 4 * hidden_dim))
    dec_b = unif(ks[8], (1, 4 * hidden_dim)) + unif(ks[9], (1, 4 * hidden_dim))

    fc_w = unif(ks[10], (hidden_dim, output_dim))
    fc_b = unif(ks[11], (1, output_dim))

    # Lane-dense output head: pad the vocab dim to a multiple of 128.  Padded
    # bias lanes get -1e30 so the in-kernel argmax never picks them.
    o_pad = max(128, ((output_dim + 127) // 128) * 128)
    fc_w_pad = jnp.zeros((hidden_dim, o_pad), jnp.float32).at[:, :output_dim].set(fc_w)
    fc_b_pad = jnp.full((1, o_pad), -1e30, jnp.float32).at[:, :output_dim].set(fc_b)

    # Fold the decoder embedding into its input projection:
    # (one_hot @ E) @ W_x == one_hot @ (E @ W_x)   (f32 fold, then bf16 cast).
    dec_embwx = jnp.dot(dec_emb, dec_wx)

    return dict(
        emb=emb,                                                 # f32, host-side take
        enc_wx=enc_wx.astype(jnp.bfloat16),
        enc_wh=enc_wh.astype(jnp.bfloat16),
        enc_b=enc_b,                                             # f32
        dec_embwx=dec_embwx.astype(jnp.bfloat16),
        dec_wh=dec_wh.astype(jnp.bfloat16),
        dec_b=dec_b,                                             # f32
        fc_w=fc_w_pad.astype(jnp.bfloat16),
        fc_b=fc_b_pad,                                           # f32
        out_dim=output_dim,
        hidden_dim=hidden_dim,
    )


# ------------------------- forward pass --------------------------------------

def seq2seq_forward(params, src, target, teacher_forcing_ratio=0.5, seed=0):
    """Matches Seq2SeqRNN.forward with 1-layer LSTM encoder/decoder."""
    B, _ = src.shape
    _, tgt_len = target.shape
    O = params["out_dim"]

    if tgt_len <= 1:
        return jnp.zeros((B, tgt_len, O), jnp.float32)

    # Hoisted encoder input projection: embedding lookup + x@W_x + bias for all
    # timesteps in one big XLA matmul (time-major), off the sequential path.
    src_emb = jnp.take(params["emb"], src.T, axis=0).astype(jnp.bfloat16)   # [T,B,E]
    enc_xg = (jnp.einsum("tbe,eg->tbg", src_emb, params["enc_wx"],
                         preferred_element_type=jnp.float32)
              + params["enc_b"])                                  # [Tsrc,B,4H] f32

    # Teacher-forcing coin flips (mirrors random.random() in the reference) are
    # drawn host-side and baked into a token-or-(-1) selector tensor, so the
    # compiled kernel is reused for any seed / flip pattern.
    rng = random.Random(seed)
    flags = [1] + [1 if rng.random() < teacher_forcing_ratio else 0
                   for _ in range(1, tgt_len)]                    # index 0 unused
    flags = jnp.asarray(flags, dtype=jnp.int32)                   # [Ttgt]
    tgt_tm = jnp.transpose(target.astype(jnp.int32))[:, :, None]  # [Ttgt, B, 1]
    tok_sel = jnp.where(flags[:, None, None] > 0, tgt_tm, -1)     # [Ttgt, B, 1]

    out_tm = _run_fused_seq2seq(enc_xg, params["enc_wh"], tok_sel,
                                params["dec_embwx"], params["dec_wh"],
                                params["dec_b"], params["fc_w"], params["fc_b"])
    # [Ttgt, B, Opad] -> [B, Ttgt, O]; row 0 already zero from the kernel.
    return jnp.transpose(out_tm, (1, 0, 2))[:, :, :O]


# ------------------------- demo ----------------------------------------------

if __name__ == "__main__":
    INPUT_DIM = 16      # src vocab
    OUTPUT_DIM = 16     # target vocab
    EMB_DIM = 32
    HIDDEN_DIM = 32
    B, SRC_LEN, TGT_LEN = 2, 8, 8

    key = jax.random.PRNGKey(0)
    pkey, skey, tkey = jax.random.split(key, 3)
    params = init_params(pkey, INPUT_DIM, EMB_DIM, HIDDEN_DIM, OUTPUT_DIM)

    src = jax.random.randint(skey, (B, SRC_LEN), 0, INPUT_DIM, dtype=jnp.int32)
    target = jax.random.randint(tkey, (B, TGT_LEN), 0, OUTPUT_DIM, dtype=jnp.int32)

    out = seq2seq_forward(params, src, target, teacher_forcing_ratio=0.5, seed=0)
    out = jax.block_until_ready(out)
    assert out.shape == (B, TGT_LEN, OUTPUT_DIM)
    assert bool(jnp.all(jnp.isfinite(out)))
    assert bool(jnp.all(out[:, 0, :] == 0.0))
    print("KERNEL_OK")
</pallas_src>

<mosaic_0001>
module attributes {stable_mosaic.version = 11 : i64} {
  func.func @_seq2seq_kernel(%arg0: memref<8x2x128xf32, #tpu.memory_space<vmem>>, %arg1: memref<32x128xbf16, #tpu.memory_space<vmem>>, %arg2: memref<8x2x1xi32, #tpu.memory_space<vmem>>, %arg3: memref<16x128xbf16, #tpu.memory_space<vmem>>, %arg4: memref<32x128xbf16, #tpu.memory_space<vmem>>, %arg5: memref<1x128xf32, #tpu.memory_space<vmem>>, %arg6: memref<32x128xbf16, #tpu.memory_space<vmem>>, %arg7: memref<1x128xf32, #tpu.memory_space<vmem>>, %arg8: memref<8x2x128xf32, #tpu.memory_space<vmem>>) attributes {dimension_semantics = [], scalar_prefetch = 0 : i64, scratch_operands = 0 : i64, tpu.core_type = #tpu.core_type<tc>} {
    %cst = arith.constant 0.000000e+00 : f32
    %0 = vector.broadcast %cst : f32 to vector<2x32xf32>
    %cst_0 = arith.constant 0.000000e+00 : f32
    %1 = vector.broadcast %cst_0 : f32 to vector<2x32xf32>
    %c0_i32 = arith.constant 0 : i32
    %2 = arith.index_cast %c0_i32 : i32 to index
    %c0 = arith.constant 0 : index
    %c0_1 = arith.constant 0 : index
    %3 = vector.load %arg0[%2, %c0, %c0_1] : memref<8x2x128xf32, #tpu.memory_space<vmem>>, vector<1x2x128xf32>
    %4 = vector.shape_cast %3 : vector<1x2x128xf32> to vector<2x128xf32>
    %5 = arith.truncf %0 : vector<2x32xf32> to vector<2x32xbf16>
    %c0_2 = arith.constant 0 : index
    %c0_3 = arith.constant 0 : index
    %6 = vector.load %arg1[%c0_2, %c0_3] : memref<32x128xbf16, #tpu.memory_space<vmem>>, vector<32x128xbf16>
    %cst_4 = arith.constant dense<0.000000e+00> : vector<2x128xf32>
    %7 = tpu.matmul %5, %6, %cst_4 {dimension_numbers = #tpu.dot_dimension_numbers<[1], [0], [0], [1], [0, 0, 1, 1], [], []>} : vector<2x32xbf16>, vector<32x128xbf16>, vector<2x128xf32> -> vector<2x128xf32>
    %8 = arith.addf %4, %7 : vector<2x128xf32>
    %9 = vector.extract_strided_slice %8 {offsets = [0, 0], sizes = [2, 32], strides = [1, 1]} : vector<2x128xf32> to vector<2x32xf32>
    %10 = arith.negf %9 : vector<2x32xf32>
    %11 = math.exp %10 : vector<2x32xf32>
    %cst_5 = arith.constant 1.000000e+00 : f32
    %12 = vector.broadcast %cst_5 : f32 to vector<2x32xf32>
    %13 = arith.addf %12, %11 : vector<2x32xf32>
    %14 = arith.divf %12, %13 : vector<2x32xf32>
    %15 = vector.extract_strided_slice %8 {offsets = [0, 32], sizes = [2, 32], strides = [1, 1]} : vector<2x128xf32> to vector<2x32xf32>
    %16 = arith.negf %15 : vector<2x32xf32>
    %17 = math.exp %16 : vector<2x32xf32>
    %cst_6 = arith.constant 1.000000e+00 : f32
    %18 = vector.broadcast %cst_6 : f32 to vector<2x32xf32>
    %19 = arith.addf %18, %17 : vector<2x32xf32>
    %20 = arith.divf %18, %19 : vector<2x32xf32>
    %21 = vector.extract_strided_slice %8 {offsets = [0, 64], sizes = [2, 32], strides = [1, 1]} : vector<2x128xf32> to vector<2x32xf32>
    %22 = math.tanh %21 : vector<2x32xf32>
    %23 = vector.extract_strided_slice %8 {offsets = [0, 96], sizes = [2, 32], strides = [1, 1]} : vector<2x128xf32> to vector<2x32xf32>
    %24 = arith.negf %23 : vector<2x32xf32>
    %25 = math.exp %24 : vector<2x32xf32>
    %cst_7 = arith.constant 1.000000e+00 : f32
    %26 = vector.broadcast %cst_7 : f32 to vector<2x32xf32>
    %27 = arith.addf %26, %25 : vector<2x32xf32>
    %28 = arith.divf %26, %27 : vector<2x32xf32>
    %29 = arith.mulf %20, %1 : vector<2x32xf32>
    %30 = arith.mulf %14, %22 : vector<2x32xf32>
    %31 = arith.addf %29, %30 : vector<2x32xf32>
    %32 = math.tanh %31 : vector<2x32xf32>
    %33 = arith.mulf %28, %32 : vector<2x32xf32>
    %c1_i32 = arith.constant 1 : i32
    %34 = arith.index_cast %c1_i32 : i32 to index
    %c0_8 = arith.constant 0 : index
    %c0_9 = arith.constant 0 : index
    %35 = vector.load %arg0[%34, %c0_8, %c0_9] : memref<8x2x128xf32, #tpu.memory_space<vmem>>, vector<1x2x128xf32>
    %36 = vector.shape_cast %35 : vector<1x2x128xf32> to vector<2x128xf32>
    %37 = arith.truncf %33 : vector<2x32xf32> to vector<2x32xbf16>
    %c0_10 = arith.constant 0 : index
    %c0_11 = arith.constant 0 : index
    %38 = vector.load %arg1[%c0_10, %c0_11] : memref<32x128xbf16, #tpu.memory_space<vmem>>, vector<32x128xbf16>
    %cst_12 = arith.constant dense<0.000000e+00> : vector<2x128xf32>
    %39 = tpu.matmul %37, %38, %cst_12 {dimension_numbers = #tpu.dot_dimension_numbers<[1], [0], [0], [1], [0, 0, 1, 1], [], []>} : vector<2x32xbf16>, vector<32x128xbf16>, vector<2x128xf32> -> vector<2x128xf32>
    %40 = arith.addf %36, %39 : vector<2x128xf32>
    %41 = vector.extract_strided_slice %40 {offsets = [0, 0], sizes = [2, 32], strides = [1, 1]} : vector<2x128xf32> to vector<2x32xf32>
    %42 = arith.negf %41 : vector<2x32xf32>
    %43 = math.exp %42 : vector<2x32xf32>
    %cst_13 = arith.constant 1.000000e+00 : f32
    %44 = vector.broadcast %cst_13 : f32 to vector<2x32xf32>
    %45 = arith.addf %44, %43 : vector<2x32xf32>
    %46 = arith.divf %44, %45 : vector<2x32xf32>
    %47 = vector.extract_strided_slice %40 {offsets = [0, 32], sizes = [2, 32], strides = [1, 1]} : vector<2x128xf32> to vector<2x32xf32>
    %48 = arith.negf %47 : vector<2x32xf32>
    %49 = math.exp %48 : vector<2x32xf32>
    %cst_14 = arith.constant 1.000000e+00 : f32
    %50 = vector.broadcast %cst_14 : f32 to vector<2x32xf32>
    %51 = arith.addf %50, %49 : vector<2x32xf32>
    %52 = arith.divf %50, %51 : vector<2x32xf32>
    %53 = vector.extract_strided_slice %40 {offsets = [0, 64], sizes = [2, 32], strides = [1, 1]} : vector<2x128xf32> to vector<2x32xf32>
    %54 = math.tanh %53 : vector<2x32xf32>
    %55 = vector.extract_strided_slice %40 {offsets = [0, 96], sizes = [2, 32], strides = [1, 1]} : vector<2x128xf32> to vector<2x32xf32>
    %56 = arith.negf %55 : vector<2x32xf32>
    %57 = math.exp %56 : vector<2x32xf32>
    %cst_15 = arith.constant 1.000000e+00 : f32
    %58 = vector.broadcast %cst_15 : f32 to vector<2x32xf32>
    %59 = arith.addf %58, %57 : vector<2x32xf32>
    %60 = arith.divf %58, %59 : vector<2x32xf32>
    %61 = arith.mulf %52, %31 : vector<2x32xf32>
    %62 = arith.mulf %46, %54 : vector<2x32xf32>
    %63 = arith.addf %61, %62 : vector<2x32xf32>
    %64 = math.tanh %63 : vector<2x32xf32>
    %65 = arith.mulf %60, %64 : vector<2x32xf32>
    %c2_i32 = arith.constant 2 : i32
    %66 = arith.index_cast %c2_i32 : i32 to index
    %c0_16 = arith.constant 0 : index
    %c0_17 = arith.constant 0 : index
    %67 = vector.load %arg0[%66, %c0_16, %c0_17] : memref<8x2x128xf32, #tpu.memory_space<vmem>>, vector<1x2x128xf32>
    %68 = vector.shape_cast %67 : vector<1x2x128xf32> to vector<2x128xf32>
    %69 = arith.truncf %65 : vector<2x32xf32> to vector<2x32xbf16>
    %c0_18 = arith.constant 0 : index
    %c0_19 = arith.constant 0 : index
    %70 = vector.load %arg1[%c0_18, %c0_19] : memref<32x128xbf16, #tpu.memory_space<vmem>>, vector<32x128xbf16>
    %cst_20 = arith.constant dense<0.000000e+00> : vector<2x128xf32>
    %71 = tpu.matmul %69, %70, %cst_20 {dimension_numbers = #tpu.dot_dimension_numbers<[1], [0], [0], [1], [0, 0, 1, 1], [], []>} : vector<2x32xbf16>, vector<32x128xbf16>, vector<2x128xf32> -> vector<2x128xf32>
    %72 = arith.addf %68, %71 : vector<2x128xf32>
    %73 = vector.extract_strided_slice %72 {offsets = [0, 0], sizes = [2, 32], strides = [1, 1]} : vector<2x128xf32> to vector<2x32xf32>
    %74 = arith.negf %73 : vector<2x32xf32>
    %75 = math.exp %74 : vector<2x32xf32>
    %cst_21 = arith.constant 1.000000e+00 : f32
    %76 = vector.broadcast %cst_21 : f32 to vector<2x32xf32>
    %77 = arith.addf %76, %75 : vector<2x32xf32>
    %78 = arith.divf %76, %77 : vector<2x32xf32>
    %79 = vector.extract_strided_slice %72 {offsets = [0, 32], sizes = [2, 32], strides = [1, 1]} : vector<2x128xf32> to vector<2x32xf32>
    %80 = arith.negf %79 : vector<2x32xf32>
    %81 = math.exp %80 : vector<2x32xf32>
    %cst_22 = arith.constant 1.000000e+00 : f32
    %82 = vector.broadcast %cst_22 : f32 to vector<2x32xf32>
    %83 = arith.addf %82, %81 : vector<2x32xf32>
    %84 = arith.divf %82, %83 : vector<2x32xf32>
    %85 = vector.extract_strided_slice %72 {offsets = [0, 64], sizes = [2, 32], strides = [1, 1]} : vector<2x128xf32> to vector<2x32xf32>
    %86 = math.tanh %85 : vector<2x32xf32>
    %87 = vector.extract_strided_slice %72 {offsets = [0, 96], sizes = [2, 32], strides = [1, 1]} : vector<2x128xf32> to vector<2x32xf32>
    %88 = arith.negf %87 : vector<2x32xf32>
    %89 = math.exp %88 : vector<2x32xf32>
    %cst_23 = arith.constant 1.000000e+00 : f32
    %90 = vector.broadcast %cst_23 : f32 to vector<2x32xf32>
    %91 = arith.addf %90, %89 : vector<2x32xf32>
    %92 = arith.divf %90, %91 : vector<2x32xf32>
    %93 = arith.mulf %84, %63 : vector<2x32xf32>
    %94 = arith.mulf %78, %86 : vector<2x32xf32>
    %95 = arith.addf %93, %94 : vector<2x32xf32>
    %96 = math.tanh %95 : vector<2x32xf32>
    %97 = arith.mulf %92, %96 : vector<2x32xf32>
    %c3_i32 = arith.constant 3 : i32
    %98 = arith.index_cast %c3_i32 : i32 to index
    %c0_24 = arith.constant 0 : index
    %c0_25 = arith.constant 0 : index
    %99 = vector.load %arg0[%98, %c0_24, %c0_25] : memref<8x2x128xf32, #tpu.memory_space<vmem>>, vector<1x2x128xf32>
    %100 = vector.shape_cast %99 : vector<1x2x128xf32> to vector<2x128xf32>
    %101 = arith.truncf %97 : vector<2x32xf32> to vector<2x32xbf16>
    %c0_26 = arith.constant 0 : index
    %c0_27 = arith.constant 0 : index
    %102 = vector.load %arg1[%c0_26, %c0_27] : memref<32x128xbf16, #tpu.memory_space<vmem>>, vector<32x128xbf16>
    %cst_28 = arith.constant dense<0.000000e+00> : vector<2x128xf32>
    %103 = tpu.matmul %101, %102, %cst_28 {dimension_numbers = #tpu.dot_dimension_numbers<[1], [0], [0], [1], [0, 0, 1, 1], [], []>} : vector<2x32xbf16>, vector<32x128xbf16>, vector<2x128xf32> -> vector<2x128xf32>
    %104 = arith.addf %100, %103 : vector<2x128xf32>
    %105 = vector.extract_strided_slice %104 {offsets = [0, 0], sizes = [2, 32], strides = [1, 1]} : vector<2x128xf32> to vector<2x32xf32>
    %106 = arith.negf %105 : vector<2x32xf32>
    %107 = math.exp %106 : vector<2x32xf32>
    %cst_29 = arith.constant 1.000000e+00 : f32
    %108 = vector.broadcast %cst_29 : f32 to vector<2x32xf32>
    %109 = arith.addf %108, %107 : vector<2x32xf32>
    %110 = arith.divf %108, %109 : vector<2x32xf32>
    %111 = vector.extract_strided_slice %104 {offsets = [0, 32], sizes = [2, 32], strides = [1, 1]} : vector<2x128xf32> to vector<2x32xf32>
    %112 = arith.negf %111 : vector<2x32xf32>
    %113 = math.exp %112 : vector<2x32xf32>
    %cst_30 = arith.constant 1.000000e+00 : f32
    %114 = vector.broadcast %cst_30 : f32 to vector<2x32xf32>
    %115 = arith.addf %114, %113 : vector<2x32xf32>
    %116 = arith.divf %114, %115 : vector<2x32xf32>
    %117 = vector.extract_strided_slice %104 {offsets = [0, 64], sizes = [2, 32], strides = [1, 1]} : vector<2x128xf32> to vector<2x32xf32>
    %118 = math.tanh %117 : vector<2x32xf32>
    %119 = vector.extract_strided_slice %104 {offsets = [0, 96], sizes = [2, 32], strides = [1, 1]} : vector<2x128xf32> to vector<2x32xf32>
    %120 = arith.negf %119 : vector<2x32xf32>
    %121 = math.exp %120 : vector<2x32xf32>
    %cst_31 = arith.constant 1.000000e+00 : f32
    %122 = vector.broadcast %cst_31 : f32 to vector<2x32xf32>
    %123 = arith.addf %122, %121 : vector<2x32xf32>
    %124 = arith.divf %122, %123 : vector<2x32xf32>
    %125 = arith.mulf %116, %95 : vector<2x32xf32>
    %126 = arith.mulf %110, %118 : vector<2x32xf32>
    %127 = arith.addf %125, %126 : vector<2x32xf32>
    %128 = math.tanh %127 : vector<2x32xf32>
    %129 = arith.mulf %124, %128 : vector<2x32xf32>
    %c4_i32 = arith.constant 4 : i32
    %130 = arith.index_cast %c4_i32 : i32 to index
    %c0_32 = arith.constant 0 : index
    %c0_33 = arith.constant 0 : index
    %131 = vector.load %arg0[%130, %c0_32, %c0_33] : memref<8x2x128xf32, #tpu.memory_space<vmem>>, vector<1x2x128xf32>
    %132 = vector.shape_cast %131 : vector<1x2x128xf32> to vector<2x128xf32>
    %133 = arith.truncf %129 : vector<2x32xf32> to vector<2x32xbf16>
    %c0_34 = arith.constant 0 : index
    %c0_35 = arith.constant 0 : index
    %134 = vector.load %arg1[%c0_34, %c0_35] : memref<32x128xbf16, #tpu.memory_space<vmem>>, vector<32x128xbf16>
    %cst_36 = arith.constant dense<0.000000e+00> : vector<2x128xf32>
    %135 = tpu.matmul %133, %134, %cst_36 {dimension_numbers = #tpu.dot_dimension_numbers<[1], [0], [0], [1], [0, 0, 1, 1], [], []>} : vector<2x32xbf16>, vector<32x128xbf16>, vector<2x128xf32> -> vector<2x128xf32>
    %136 = arith.addf %132, %135 : vector<2x128xf32>
    %137 = vector.extract_strided_slice %136 {offsets = [0, 0], sizes = [2, 32], strides = [1, 1]} : vector<2x128xf32> to vector<2x32xf32>
    %138 = arith.negf %137 : vector<2x32xf32>
    %139 = math.exp %138 : vector<2x32xf32>
    %cst_37 = arith.constant 1.000000e+00 : f32
    %140 = vector.broadcast %cst_37 : f32 to vector<2x32xf32>
    %141 = arith.addf %140, %139 : vector<2x32xf32>
    %142 = arith.divf %140, %141 : vector<2x32xf32>
    %143 = vector.extract_strided_slice %136 {offsets = [0, 32], sizes = [2, 32], strides = [1, 1]} : vector<2x128xf32> to vector<2x32xf32>
    %144 = arith.negf %143 : vector<2x32xf32>
    %145 = math.exp %144 : vector<2x32xf32>
    %cst_38 = arith.constant 1.000000e+00 : f32
    %146 = vector.broadcast %cst_38 : f32 to vector<2x32xf32>
    %147 = arith.addf %146, %145 : vector<2x32xf32>
    %148 = arith.divf %146, %147 : vector<2x32xf32>
    %149 = vector.extract_strided_slice %136 {offsets = [0, 64], sizes = [2, 32], strides = [1, 1]} : vector<2x128xf32> to vector<2x32xf32>
    %150 = math.tanh %149 : vector<2x32xf32>
    %151 = vector.extract_strided_slice %136 {offsets = [0, 96], sizes = [2, 32], strides = [1, 1]} : vector<2x128xf32> to vector<2x32xf32>
    %152 = arith.negf %151 : vector<2x32xf32>
    %153 = math.exp %152 : vector<2x32xf32>
    %cst_39 = arith.constant 1.000000e+00 : f32
    %154 = vector.broadcast %cst_39 : f32 to vector<2x32xf32>
    %155 = arith.addf %154, %153 : vector<2x32xf32>
    %156 = arith.divf %154, %155 : vector<2x32xf32>
    %157 = arith.mulf %148, %127 : vector<2x32xf32>
    %158 = arith.mulf %142, %150 : vector<2x32xf32>
    %159 = arith.addf %157, %158 : vector<2x32xf32>
    %160 = math.tanh %159 : vector<2x32xf32>
    %161 = arith.mulf %156, %160 : vector<2x32xf32>
    %c5_i32 = arith.constant 5 : i32
    %162 = arith.index_cast %c5_i32 : i32 to index
    %c0_40 = arith.constant 0 : index
    %c0_41 = arith.constant 0 : index
    %163 = vector.load %arg0[%162, %c0_40, %c0_41] : memref<8x2x128xf32, #tpu.memory_space<vmem>>, vector<1x2x128xf32>
    %164 = vector.shape_cast %163 : vector<1x2x128xf32> to vector<2x128xf32>
    %165 = arith.truncf %161 : vector<2x32xf32> to vector<2x32xbf16>
    %c0_42 = arith.constant 0 : index
    %c0_43 = arith.constant 0 : index
    %166 = vector.load %arg1[%c0_42, %c0_43] : memref<32x128xbf16, #tpu.memory_space<vmem>>, vector<32x128xbf16>
    %cst_44 = arith.constant dense<0.000000e+00> : vector<2x128xf32>
    %167 = tpu.matmul %165, %166, %cst_44 {dimension_numbers = #tpu.dot_dimension_numbers<[1], [0], [0], [1], [0, 0, 1, 1], [], []>} : vector<2x32xbf16>, vector<32x128xbf16>, vector<2x128xf32> -> vector<2x128xf32>
    %168 = arith.addf %164, %167 : vector<2x128xf32>
    %169 = vector.extract_strided_slice %168 {offsets = [0, 0], sizes = [2, 32], strides = [1, 1]} : vector<2x128xf32> to vector<2x32xf32>
    %170 = arith.negf %169 : vector<2x32xf32>
    %171 = math.exp %170 : vector<2x32xf32>
    %cst_45 = arith.constant 1.000000e+00 : f32
    %172 = vector.broadcast %cst_45 : f32 to vector<2x32xf32>
    %173 = arith.addf %172, %171 : vector<2x32xf32>
    %174 = arith.divf %172, %173 : vector<2x32xf32>
    %175 = vector.extract_strided_slice %168 {offsets = [0, 32], sizes = [2, 32], strides = [1, 1]} : vector<2x128xf32> to vector<2x32xf32>
    %176 = arith.negf %175 : vector<2x32xf32>
    %177 = math.exp %176 : vector<2x32xf32>
    %cst_46 = arith.constant 1.000000e+00 : f32
    %178 = vector.broadcast %cst_46 : f32 to vector<2x32xf32>
    %179 = arith.addf %178, %177 : vector<2x32xf32>
    %180 = arith.divf %178, %179 : vector<2x32xf32>
    %181 = vector.extract_strided_slice %168 {offsets = [0, 64], sizes = [2, 32], strides = [1, 1]} : vector<2x128xf32> to vector<2x32xf32>
    %182 = math.tanh %181 : vector<2x32xf32>
    %183 = vector.extract_strided_slice %168 {offsets = [0, 96], sizes = [2, 32], strides = [1, 1]} : vector<2x128xf32> to vector<2x32xf32>
    %184 = arith.negf %183 : vector<2x32xf32>
    %185 = math.exp %184 : vector<2x32xf32>
    %cst_47 = arith.constant 1.000000e+00 : f32
    %186 = vector.broadcast %cst_47 : f32 to vector<2x32xf32>
    %187 = arith.addf %186, %185 : vector<2x32xf32>
    %188 = arith.divf %186, %187 : vector<2x32xf32>
    %189 = arith.mulf %180, %159 : vector<2x32xf32>
    %190 = arith.mulf %174, %182 : vector<2x32xf32>
    %191 = arith.addf %189, %190 : vector<2x32xf32>
    %192 = math.tanh %191 : vector<2x32xf32>
    %193 = arith.mulf %188, %192 : vector<2x32xf32>
    %c6_i32 = arith.constant 6 : i32
    %194 = arith.index_cast %c6_i32 : i32 to index
    %c0_48 = arith.constant 0 : index
    %c0_49 = arith.constant 0 : index
    %195 = vector.load %arg0[%194, %c0_48, %c0_49] : memref<8x2x128xf32, #tpu.memory_space<vmem>>, vector<1x2x128xf32>
    %196 = vector.shape_cast %195 : vector<1x2x128xf32> to vector<2x128xf32>
    %197 = arith.truncf %193 : vector<2x32xf32> to vector<2x32xbf16>
    %c0_50 = arith.constant 0 : index
    %c0_51 = arith.constant 0 : index
    %198 = vector.load %arg1[%c0_50, %c0_51] : memref<32x128xbf16, #tpu.memory_space<vmem>>, vector<32x128xbf16>
    %cst_52 = arith.constant dense<0.000000e+00> : vector<2x128xf32>
    %199 = tpu.matmul %197, %198, %cst_52 {dimension_numbers = #tpu.dot_dimension_numbers<[1], [0], [0], [1], [0, 0, 1, 1], [], []>} : vector<2x32xbf16>, vector<32x128xbf16>, vector<2x128xf32> -> vector<2x128xf32>
    %200 = arith.addf %196, %199 : vector<2x128xf32>
    %201 = vector.extract_strided_slice %200 {offsets = [0, 0], sizes = [2, 32], strides = [1, 1]} : vector<2x128xf32> to vector<2x32xf32>
    %202 = arith.negf %201 : vector<2x32xf32>
    %203 = math.exp %202 : vector<2x32xf32>
    %cst_53 = arith.constant 1.000000e+00 : f32
    %204 = vector.broadcast %cst_53 : f32 to vector<2x32xf32>
    %205 = arith.addf %204, %203 : vector<2x32xf32>
    %206 = arith.divf %204, %205 : vector<2x32xf32>
    %207 = vector.extract_strided_slice %200 {offsets = [0, 32], sizes = [2, 32], strides = [1, 1]} : vector<2x128xf32> to vector<2x32xf32>
    %208 = arith.negf %207 : vector<2x32xf32>
    %209 = math.exp %208 : vector<2x32xf32>
    %cst_54 = arith.constant 1.000000e+00 : f32
    %210 = vector.broadcast %cst_54 : f32 to vector<2x32xf32>
    %211 = arith.addf %210, %209 : vector<2x32xf32>
    %212 = arith.divf %210, %211 : vector<2x32xf32>
    %213 = vector.extract_strided_slice %200 {offsets = [0, 64], sizes = [2, 32], strides = [1, 1]} : vector<2x128xf32> to vector<2x32xf32>
    %214 = math.tanh %213 : vector<2x32xf32>
    %215 = vector.extract_strided_slice %200 {offsets = [0, 96], sizes = [2, 32], strides = [1, 1]} : vector<2x128xf32> to vector<2x32xf32>
    %216 = arith.negf %215 : vector<2x32xf32>
    %217 = math.exp %216 : vector<2x32xf32>
    %cst_55 = arith.constant 1.000000e+00 : f32
    %218 = vector.broadcast %cst_55 : f32 to vector<2x32xf32>
    %219 = arith.addf %218, %217 : vector<2x32xf32>
    %220 = arith.divf %218, %219 : vector<2x32xf32>
    %221 = arith.mulf %212, %191 : vector<2x32xf32>
    %222 = arith.mulf %206, %214 : vector<2x32xf32>
    %223 = arith.addf %221, %222 : vector<2x32xf32>
    %224 = math.tanh %223 : vector<2x32xf32>
    %225 = arith.mulf %220, %224 : vector<2x32xf32>
    %c7_i32 = arith.constant 7 : i32
    %226 = arith.index_cast %c7_i32 : i32 to index
    %c0_56 = arith.constant 0 : index
    %c0_57 = arith.constant 0 : index
    %227 = vector.load %arg0[%226, %c0_56, %c0_57] : memref<8x2x128xf32, #tpu.memory_space<vmem>>, vector<1x2x128xf32>
    %228 = vector.shape_cast %227 : vector<1x2x128xf32> to vector<2x128xf32>
    %229 = arith.truncf %225 : vector<2x32xf32> to vector<2x32xbf16>
    %c0_58 = arith.constant 0 : index
    %c0_59 = arith.constant 0 : index
    %230 = vector.load %arg1[%c0_58, %c0_59] : memref<32x128xbf16, #tpu.memory_space<vmem>>, vector<32x128xbf16>
    %cst_60 = arith.constant dense<0.000000e+00> : vector<2x128xf32>
    %231 = tpu.matmul %229, %230, %cst_60 {dimension_numbers = #tpu.dot_dimension_numbers<[1], [0], [0], [1], [0, 0, 1, 1], [], []>} : vector<2x32xbf16>, vector<32x128xbf16>, vector<2x128xf32> -> vector<2x128xf32>
    %232 = arith.addf %228, %231 : vector<2x128xf32>
    %233 = vector.extract_strided_slice %232 {offsets = [0, 0], sizes = [2, 32], strides = [1, 1]} : vector<2x128xf32> to vector<2x32xf32>
    %234 = arith.negf %233 : vector<2x32xf32>
    %235 = math.exp %234 : vector<2x32xf32>
    %cst_61 = arith.constant 1.000000e+00 : f32
    %236 = vector.broadcast %cst_61 : f32 to vector<2x32xf32>
    %237 = arith.addf %236, %235 : vector<2x32xf32>
    %238 = arith.divf %236, %237 : vector<2x32xf32>
    %239 = vector.extract_strided_slice %232 {offsets = [0, 32], sizes = [2, 32], strides = [1, 1]} : vector<2x128xf32> to vector<2x32xf32>
    %240 = arith.negf %239 : vector<2x32xf32>
    %241 = math.exp %240 : vector<2x32xf32>
    %cst_62 = arith.constant 1.000000e+00 : f32
    %242 = vector.broadcast %cst_62 : f32 to vector<2x32xf32>
    %243 = arith.addf %242, %241 : vector<2x32xf32>
    %244 = arith.divf %242, %243 : vector<2x32xf32>
    %245 = vector.extract_strided_slice %232 {offsets = [0, 64], sizes = [2, 32], strides = [1, 1]} : vector<2x128xf32> to vector<2x32xf32>
    %246 = math.tanh %245 : vector<2x32xf32>
    %247 = vector.extract_strided_slice %232 {offsets = [0, 96], sizes = [2, 32], strides = [1, 1]} : vector<2x128xf32> to vector<2x32xf32>
    %248 = arith.negf %247 : vector<2x32xf32>
    %249 = math.exp %248 : vector<2x32xf32>
    %cst_63 = arith.constant 1.000000e+00 : f32
    %250 = vector.broadcast %cst_63 : f32 to vector<2x32xf32>
    %251 = arith.addf %250, %249 : vector<2x32xf32>
    %252 = arith.divf %250, %251 : vector<2x32xf32>
    %253 = arith.mulf %244, %223 : vector<2x32xf32>
    %254 = arith.mulf %238, %246 : vector<2x32xf32>
    %255 = arith.addf %253, %254 : vector<2x32xf32>
    %256 = math.tanh %255 : vector<2x32xf32>
    %257 = arith.mulf %252, %256 : vector<2x32xf32>
    %c8_i32 = arith.constant 8 : i32
    %cst_64 = arith.constant 0.000000e+00 : f32
    %258 = vector.broadcast %cst_64 : f32 to vector<2x128xf32>
    %c0_65 = arith.constant 0 : index
    %c0_66 = arith.constant 0 : index
    %c0_67 = arith.constant 0 : index
    %259 = vector.load %arg8[%c0_65, %c0_66, %c0_67] : memref<8x2x128xf32, #tpu.memory_space<vmem>>, vector<1x2x128xf32>
    %260 = vector.shape_cast %259 : vector<1x2x128xf32> to vector<2x128xf32>
    %261 = vector.shape_cast %258 : vector<2x128xf32> to vector<1x2x128xf32>
    tpu.vector_store %arg8[%c0_65, %c0_66, %c0_67], %261 {strides = array<i32>} : memref<8x2x128xf32, #tpu.memory_space<vmem>>, vector<1x2x128xf32>,
    %262 = tpu.iota {dimensions = array<i32: 1>} : vector<2x16xi32>
    %263 = tpu.iota {dimensions = array<i32: 1>} : vector<2x128xi32>
    %c0_68 = arith.constant 0 : index
    %c0_69 = arith.constant 0 : index
    %c0_70 = arith.constant 0 : index
    %264 = vector.load %arg2[%c0_68, %c0_69, %c0_70] : memref<8x2x1xi32, #tpu.memory_space<vmem>>, vector<1x2x1xi32>
    %265 = vector.shape_cast %264 : vector<1x2x1xi32> to vector<2x1xi32>
    %266 = vector.broadcast %265 : vector<2x1xi32> to vector<2x16xi32>
    %267 = arith.cmpi eq, %262, %266 : vector<2x16xi32>
    %268 = arith.extui %267 : vector<2x16xi1> to vector<2x16xi32>
    %269 = arith.sitofp %268 : vector<2x16xi32> to vector<2x16xf32>
    %270 = arith.truncf %269 : vector<2x16xf32> to vector<2x16xbf16>
    %c1_i32_71 = arith.constant 1 : i32
    %c0_72 = arith.constant 0 : index
    %c0_73 = arith.constant 0 : index
    %271 = vector.load %arg3[%c0_72, %c0_73] : memref<16x128xbf16, #tpu.memory_space<vmem>>, vector<16x128xbf16>
    %cst_74 = arith.constant dense<0.000000e+00> : vector<2x128xf32>
    %272 = tpu.matmul %270, %271, %cst_74 {dimension_numbers = #tpu.dot_dimension_numbers<[1], [0], [0], [1], [0, 0, 1, 1], [], []>} : vector<2x16xbf16>, vector<16x128xbf16>, vector<2x128xf32> -> vector<2x128xf32>
    %273 = arith.truncf %257 : vector<2x32xf32> to vector<2x32xbf16>
    %c0_75 = arith.constant 0 : index
    %c0_76 = arith.constant 0 : index
    %274 = vector.load %arg4[%c0_75, %c0_76] : memref<32x128xbf16, #tpu.memory_space<vmem>>, vector<32x128xbf16>
    %cst_77 = arith.constant dense<0.000000e+00> : vector<2x128xf32>
    %275 = tpu.matmul %273, %274, %cst_77 {dimension_numbers = #tpu.dot_dimension_numbers<[1], [0], [0], [1], [0, 0, 1, 1], [], []>} : vector<2x32xbf16>, vector<32x128xbf16>, vector<2x128xf32> -> vector<2x128xf32>
    %276 = arith.addf %272, %275 : vector<2x128xf32>
    %c0_78 = arith.constant 0 : index
    %c0_79 = arith.constant 0 : index
    %277 = vector.load %arg5[%c0_78, %c0_79] : memref<1x128xf32, #tpu.memory_space<vmem>>, vector<1x128xf32>
    %278 = vector.broadcast %277 : vector<1x128xf32> to vector<2x128xf32>
    %279 = arith.addf %276, %278 : vector<2x128xf32>
    %280 = vector.extract_strided_slice %279 {offsets = [0, 0], sizes = [2, 32], strides = [1, 1]} : vector<2x128xf32> to vector<2x32xf32>
    %281 = arith.negf %280 : vector<2x32xf32>
    %282 = math.exp %281 : vector<2x32xf32>
    %cst_80 = arith.constant 1.000000e+00 : f32
    %283 = vector.broadcast %cst_80 : f32 to vector<2x32xf32>
    %284 = arith.addf %283, %282 : vector<2x32xf32>
    %285 = arith.divf %283, %284 : vector<2x32xf32>
    %286 = vector.extract_strided_slice %279 {offsets = [0, 32], sizes = [2, 32], strides = [1, 1]} : vector<2x128xf32> to vector<2x32xf32>
    %287 = arith.negf %286 : vector<2x32xf32>
    %288 = math.exp %287 : vector<2x32xf32>
    %cst_81 = arith.constant 1.000000e+00 : f32
    %289 = vector.broadcast %cst_81 : f32 to vector<2x32xf32>
    %290 = arith.addf %289, %288 : vector<2x32xf32>
    %291 = arith.divf %289, %290 : vector<2x32xf32>
    %292 = vector.extract_strided_slice %279 {offsets = [0, 64], sizes = [2, 32], strides = [1, 1]} : vector<2x128xf32> to vector<2x32xf32>
    %293 = math.tanh %292 : vector<2x32xf32>
    %294 = vector.extract_strided_slice %279 {offsets = [0, 96], sizes = [2, 32], strides = [1, 1]} : vector<2x128xf32> to vector<2x32xf32>
    %295 = arith.negf %294 : vector<2x32xf32>
    %296 = math.exp %295 : vector<2x32xf32>
    %cst_82 = arith.constant 1.000000e+00 : f32
    %297 = vector.broadcast %cst_82 : f32 to vector<2x32xf32>
    %298 = arith.addf %297, %296 : vector<2x32xf32>
    %299 = arith.divf %297, %298 : vector<2x32xf32>
    %300 = arith.mulf %291, %255 : vector<2x32xf32>
    %301 = arith.mulf %285, %293 : vector<2x32xf32>
    %302 = arith.addf %300, %301 : vector<2x32xf32>
    %303 = math.tanh %302 : vector<2x32xf32>
    %304 = arith.mulf %299, %303 : vector<2x32xf32>
    %305 = arith.truncf %304 : vector<2x32xf32> to vector<2x32xbf16>
    %c0_83 = arith.constant 0 : index
    %c0_84 = arith.constant 0 : index
    %306 = vector.load %arg6[%c0_83, %c0_84] : memref<32x128xbf16, #tpu.memory_space<vmem>>, vector<32x128xbf16>
    %cst_85 = arith.constant dense<0.000000e+00> : vector<2x128xf32>
    %307 = tpu.matmul %305, %306, %cst_85 {dimension_numbers = #tpu.dot_dimension_numbers<[1], [0], [0], [1], [0, 0, 1, 1], [], []>} : vector<2x32xbf16>, vector<32x128xbf16>, vector<2x128xf32> -> vector<2x128xf32>
    %c0_86 = arith.constant 0 : index
    %c0_87 = arith.constant 0 : index
    %308 = vector.load %arg7[%c0_86, %c0_87] : memref<1x128xf32, #tpu.memory_space<vmem>>, vector<1x128xf32>
    %309 = vector.broadcast %308 : vector<1x128xf32> to vector<2x128xf32>
    %310 = arith.addf %307, %309 : vector<2x128xf32>
    %311 = arith.index_cast %c1_i32_71 : i32 to index
    %c0_88 = arith.constant 0 : index
    %c0_89 = arith.constant 0 : index
    %312 = vector.load %arg8[%311, %c0_88, %c0_89] : memref<8x2x128xf32, #tpu.memory_space<vmem>>, vector<1x2x128xf32>
    %313 = vector.shape_cast %312 : vector<1x2x128xf32> to vector<2x128xf32>
    %314 = vector.shape_cast %310 : vector<2x128xf32> to vector<1x2x128xf32>
    tpu.vector_store %arg8[%311, %c0_88, %c0_89], %314 {strides = array<i32>} : memref<8x2x128xf32, #tpu.memory_space<vmem>>, vector<1x2x128xf32>,
    %cst_90 = arith.constant dense<0xFF800000> : vector<2xf32>
    %315 = vector.multi_reduction <maximumf>, %310, %cst_90 [1] : vector<2x128xf32> to vector<2xf32>
    %316 = vector.shape_cast %315 : vector<2xf32> to vector<2x1xf32>
    %317 = vector.broadcast %316 : vector<2x1xf32> to vector<2x128xf32>
    %318 = arith.cmpf oeq, %310, %317 : vector<2x128xf32>
    %c128_i32 = arith.constant 128 : i32
    %319 = vector.broadcast %c128_i32 : i32 to vector<2x128xi32>
    %320 = arith.select %318, %263, %319 : vector<2x128xi1>, vector<2x128xi32>
    %cst_91 = arith.constant dense<2147483647> : vector<2xi32>
    %321 = vector.multi_reduction <minsi>, %320, %cst_91 [1] : vector<2x128xi32> to vector<2xi32>
    %322 = vector.shape_cast %321 : vector<2xi32> to vector<2x1xi32>
    %323 = arith.index_cast %c1_i32_71 : i32 to index
    %c0_92 = arith.constant 0 : index
    %c0_93 = arith.constant 0 : index
    %324 = vector.load %arg2[%323, %c0_92, %c0_93] : memref<8x2x1xi32, #tpu.memory_space<vmem>>, vector<1x2x1xi32>
    %325 = vector.shape_cast %324 : vector<1x2x1xi32> to vector<2x1xi32>
    %c0_i32_94 = arith.constant 0 : i32
    %326 = vector.broadcast %c0_i32_94 : i32 to vector<2x1xi32>
    %327 = arith.cmpi sge, %325, %326 : vector<2x1xi32>
    %328 = arith.select %327, %325, %322 : vector<2x1xi1>, vector<2x1xi32>
    %329 = vector.broadcast %328 : vector<2x1xi32> to vector<2x16xi32>
    %330 = arith.cmpi eq, %262, %329 : vector<2x16xi32>
    %331 = arith.extui %330 : vector<2x16xi1> to vector<2x16xi32>
    %332 = arith.sitofp %331 : vector<2x16xi32> to vector<2x16xf32>
    %333 = arith.truncf %332 : vector<2x16xf32> to vector<2x16xbf16>
    %c2_i32_95 = arith.constant 2 : i32
    %c0_96 = arith.constant 0 : index
    %c0_97 = arith.constant 0 : index
    %334 = vector.load %arg3[%c0_96, %c0_97] : memref<16x128xbf16, #tpu.memory_space<vmem>>, vector<16x128xbf16>
    %cst_98 = arith.constant dense<0.000000e+00> : vector<2x128xf32>
    %335 = tpu.matmul %333, %334, %cst_98 {dimension_numbers = #tpu.dot_dimension_numbers<[1], [0], [0], [1], [0, 0, 1, 1], [], []>} : vector<2x16xbf16>, vector<16x128xbf16>, vector<2x128xf32> -> vector<2x128xf32>
    %336 = arith.truncf %304 : vector<2x32xf32> to vector<2x32xbf16>
    %c0_99 = arith.constant 0 : index
    %c0_100 = arith.constant 0 : index
    %337 = vector.load %arg4[%c0_99, %c0_100] : memref<32x128xbf16, #tpu.memory_space<vmem>>, vector<32x128xbf16>
    %cst_101 = arith.constant dense<0.000000e+00> : vector<2x128xf32>
    %338 = tpu.matmul %336, %337, %cst_101 {dimension_numbers = #tpu.dot_dimension_numbers<[1], [0], [0], [1], [0, 0, 1, 1], [], []>} : vector<2x32xbf16>, vector<32x128xbf16>, vector<2x128xf32> -> vector<2x128xf32>
    %339 = arith.addf %335, %338 : vector<2x128xf32>
    %c0_102 = arith.constant 0 : index
    %c0_103 = arith.constant 0 : index
    %340 = vector.load %arg5[%c0_102, %c0_103] : memref<1x128xf32, #tpu.memory_space<vmem>>, vector<1x128xf32>
    %341 = vector.broadcast %340 : vector<1x128xf32> to vector<2x128xf32>
    %342 = arith.addf %339, %341 : vector<2x128xf32>
    %343 = vector.extract_strided_slice %342 {offsets = [0, 0], sizes = [2, 32], strides = [1, 1]} : vector<2x128xf32> to vector<2x32xf32>
    %344 = arith.negf %343 : vector<2x32xf32>
    %345 = math.exp %344 : vector<2x32xf32>
    %cst_104 = arith.constant 1.000000e+00 : f32
    %346 = vector.broadcast %cst_104 : f32 to vector<2x32xf32>
    %347 = arith.addf %346, %345 : vector<2x32xf32>
    %348 = arith.divf %346, %347 : vector<2x32xf32>
    %349 = vector.extract_strided_slice %342 {offsets = [0, 32], sizes = [2, 32], strides = [1, 1]} : vector<2x128xf32> to vector<2x32xf32>
    %350 = arith.negf %349 : vector<2x32xf32>
    %351 = math.exp %350 : vector<2x32xf32>
    %cst_105 = arith.constant 1.000000e+00 : f32
    %352 = vector.broadcast %cst_105 : f32 to vector<2x32xf32>
    %353 = arith.addf %352, %351 : vector<2x32xf32>
    %354 = arith.divf %352, %353 : vector<2x32xf32>
    %355 = vector.extract_strided_slice %342 {offsets = [0, 64], sizes = [2, 32], strides = [1, 1]} : vector<2x128xf32> to vector<2x32xf32>
    %356 = math.tanh %355 : vector<2x32xf32>
    %357 = vector.extract_strided_slice %342 {offsets = [0, 96], sizes = [2, 32], strides = [1, 1]} : vector<2x128xf32> to vector<2x32xf32>
    %358 = arith.negf %357 : vector<2x32xf32>
    %359 = math.exp %358 : vector<2x32xf32>
    %cst_106 = arith.constant 1.000000e+00 : f32
    %360 = vector.broadcast %cst_106 : f32 to vector<2x32xf32>
    %361 = arith.addf %360, %359 : vector<2x32xf32>
    %362 = arith.divf %360, %361 : vector<2x32xf32>
    %363 = arith.mulf %354, %302 : vector<2x32xf32>
    %364 = arith.mulf %348, %356 : vector<2x32xf32>
    %365 = arith.addf %363, %364 : vector<2x32xf32>
    %366 = math.tanh %365 : vector<2x32xf32>
    %367 = arith.mulf %362, %366 : vector<2x32xf32>
    %368 = arith.truncf %367 : vector<2x32xf32> to vector<2x32xbf16>
    %c0_107 = arith.constant 0 : index
    %c0_108 = arith.constant 0 : index
    %369 = vector.load %arg6[%c0_107, %c0_108] : memref<32x128xbf16, #tpu.memory_space<vmem>>, vector<32x128xbf16>
    %cst_109 = arith.constant dense<0.000000e+00> : vector<2x128xf32>
    %370 = tpu.matmul %368, %369, %cst_109 {dimension_numbers = #tpu.dot_dimension_numbers<[1], [0], [0], [1], [0, 0, 1, 1], [], []>} : vector<2x32xbf16>, vector<32x128xbf16>, vector<2x128xf32> -> vector<2x128xf32>
    %c0_110 = arith.constant 0 : index
    %c0_111 = arith.constant 0 : index
    %371 = vector.load %arg7[%c0_110, %c0_111] : memref<1x128xf32, #tpu.memory_space<vmem>>, vector<1x128xf32>
    %372 = vector.broadcast %371 : vector<1x128xf32> to vector<2x128xf32>
    %373 = arith.addf %370, %372 : vector<2x128xf32>
    %374 = arith.index_cast %c2_i32_95 : i32 to index
    %c0_112 = arith.constant 0 : index
    %c0_113 = arith.constant 0 : index
    %375 = vector.load %arg8[%374, %c0_112, %c0_113] : memref<8x2x128xf32, #tpu.memory_space<vmem>>, vector<1x2x128xf32>
    %376 = vector.shape_cast %375 : vector<1x2x128xf32> to vector<2x128xf32>
    %377 = vector.shape_cast %373 : vector<2x128xf32> to vector<1x2x128xf32>
    tpu.vector_store %arg8[%374, %c0_112, %c0_113], %377 {strides = array<i32>} : memref<8x2x128xf32, #tpu.memory_space<vmem>>, vector<1x2x128xf32>,
    %cst_114 = arith.constant dense<0xFF800000> : vector<2xf32>
    %378 = vector.multi_reduction <maximumf>, %373, %cst_114 [1] : vector<2x128xf32> to vector<2xf32>
    %379 = vector.shape_cast %378 : vector<2xf32> to vector<2x1xf32>
    %380 = vector.broadcast %379 : vector<2x1xf32> to vector<2x128xf32>
    %381 = arith.cmpf oeq, %373, %380 : vector<2x128xf32>
    %c128_i32_115 = arith.constant 128 : i32
    %382 = vector.broadcast %c128_i32_115 : i32 to vector<2x128xi32>
    %383 = arith.select %381, %263, %382 : vector<2x128xi1>, vector<2x128xi32>
    %cst_116 = arith.constant dense<2147483647> : vector<2xi32>
    %384 = vector.multi_reduction <minsi>, %383, %cst_116 [1] : vector<2x128xi32> to vector<2xi32>
    %385 = vector.shape_cast %384 : vector<2xi32> to vector<2x1xi32>
    %386 = arith.index_cast %c2_i32_95 : i32 to index
    %c0_117 = arith.constant 0 : index
    %c0_118 = arith.constant 0 : index
    %387 = vector.load %arg2[%386, %c0_117, %c0_118] : memref<8x2x1xi32, #tpu.memory_space<vmem>>, vector<1x2x1xi32>
    %388 = vector.shape_cast %387 : vector<1x2x1xi32> to vector<2x1xi32>
    %c0_i32_119 = arith.constant 0 : i32
    %389 = vector.broadcast %c0_i32_119 : i32 to vector<2x1xi32>
    %390 = arith.cmpi sge, %388, %389 : vector<2x1xi32>
    %391 = arith.select %390, %388, %385 : vector<2x1xi1>, vector<2x1xi32>
    %392 = vector.broadcast %391 : vector<2x1xi32> to vector<2x16xi32>
    %393 = arith.cmpi eq, %262, %392 : vector<2x16xi32>
    %394 = arith.extui %393 : vector<2x16xi1> to vector<2x16xi32>
    %395 = arith.sitofp %394 : vector<2x16xi32> to vector<2x16xf32>
    %396 = arith.truncf %395 : vector<2x16xf32> to vector<2x16xbf16>
    %c3_i32_120 = arith.constant 3 : i32
    %c0_121 = arith.constant 0 : index
    %c0_122 = arith.constant 0 : index
    %397 = vector.load %arg3[%c0_121, %c0_122] : memref<16x128xbf16, #tpu.memory_space<vmem>>, vector<16x128xbf16>
    %cst_123 = arith.constant dense<0.000000e+00> : vector<2x128xf32>
    %398 = tpu.matmul %396, %397, %cst_123 {dimension_numbers = #tpu.dot_dimension_numbers<[1], [0], [0], [1], [0, 0, 1, 1], [], []>} : vector<2x16xbf16>, vector<16x128xbf16>, vector<2x128xf32> -> vector<2x128xf32>
    %399 = arith.truncf %367 : vector<2x32xf32> to vector<2x32xbf16>
    %c0_124 = arith.constant 0 : index
    %c0_125 = arith.constant 0 : index
    %400 = vector.load %arg4[%c0_124, %c0_125] : memref<32x128xbf16, #tpu.memory_space<vmem>>, vector<32x128xbf16>
    %cst_126 = arith.constant dense<0.000000e+00> : vector<2x128xf32>
    %401 = tpu.matmul %399, %400, %cst_126 {dimension_numbers = #tpu.dot_dimension_numbers<[1], [0], [0], [1], [0, 0, 1, 1], [], []>} : vector<2x32xbf16>, vector<32x128xbf16>, vector<2x128xf32> -> vector<2x128xf32>
    %402 = arith.addf %398, %401 : vector<2x128xf32>
    %c0_127 = arith.constant 0 : index
    %c0_128 = arith.constant 0 : index
    %403 = vector.load %arg5[%c0_127, %c0_128] : memref<1x128xf32, #tpu.memory_space<vmem>>, vector<1x128xf32>
    %404 = vector.broadcast %403 : vector<1x128xf32> to vector<2x128xf32>
    %405 = arith.addf %402, %404 : vector<2x128xf32>
    %406 = vector.extract_strided_slice %405 {offsets = [0, 0], sizes = [2, 32], strides = [1, 1]} : vector<2x128xf32> to vector<2x32xf32>
    %407 = arith.negf %406 : vector<2x32xf32>
    %408 = math.exp %407 : vector<2x32xf32>
    %cst_129 = arith.constant 1.000000e+00 : f32
    %409 = vector.broadcast %cst_129 : f32 to vector<2x32xf32>
    %410 = arith.addf %409, %408 : vector<2x32xf32>
    %411 = arith.divf %409, %410 : vector<2x32xf32>
    %412 = vector.extract_strided_slice %405 {offsets = [0, 32], sizes = [2, 32], strides = [1, 1]} : vector<2x128xf32> to vector<2x32xf32>
    %413 = arith.negf %412 : vector<2x32xf32>
    %414 = math.exp %413 : vector<2x32xf32>
    %cst_130 = arith.constant 1.000000e+00 : f32
    %415 = vector.broadcast %cst_130 : f32 to vector<2x32xf32>
    %416 = arith.addf %415, %414 : vector<2x32xf32>
    %417 = arith.divf %415, %416 : vector<2x32xf32>
    %418 = vector.extract_strided_slice %405 {offsets = [0, 64], sizes = [2, 32], strides = [1, 1]} : vector<2x128xf32> to vector<2x32xf32>
    %419 = math.tanh %418 : vector<2x32xf32>
    %420 = vector.extract_strided_slice %405 {offsets = [0, 96], sizes = [2, 32], strides = [1, 1]} : vector<2x128xf32> to vector<2x32xf32>
    %421 = arith.negf %420 : vector<2x32xf32>
    %422 = math.exp %421 : vector<2x32xf32>
    %cst_131 = arith.constant 1.000000e+00 : f32
    %423 = vector.broadcast %cst_131 : f32 to vector<2x32xf32>
    %424 = arith.addf %423, %422 : vector<2x32xf32>
    %425 = arith.divf %423, %424 : vector<2x32xf32>
    %426 = arith.mulf %417, %365 : vector<2x32xf32>
    %427 = arith.mulf %411, %419 : vector<2x32xf32>
    %428 = arith.addf %426, %427 : vector<2x32xf32>
    %429 = math.tanh %428 : vector<2x32xf32>
    %430 = arith.mulf %425, %429 : vector<2x32xf32>
    %431 = arith.truncf %430 : vector<2x32xf32> to vector<2x32xbf16>
    %c0_132 = arith.constant 0 : index
    %c0_133 = arith.constant 0 : index
    %432 = vector.load %arg6[%c0_132, %c0_133] : memref<32x128xbf16, #tpu.memory_space<vmem>>, vector<32x128xbf16>
    %cst_134 = arith.constant dense<0.000000e+00> : vector<2x128xf32>
    %433 = tpu.matmul %431, %432, %cst_134 {dimension_numbers = #tpu.dot_dimension_numbers<[1], [0], [0], [1], [0, 0, 1, 1], [], []>} : vector<2x32xbf16>, vector<32x128xbf16>, vector<2x128xf32> -> vector<2x128xf32>
    %c0_135 = arith.constant 0 : index
    %c0_136 = arith.constant 0 : index
    %434 = vector.load %arg7[%c0_135, %c0_136] : memref<1x128xf32, #tpu.memory_space<vmem>>, vector<1x128xf32>
    %435 = vector.broadcast %434 : vector<1x128xf32> to vector<2x128xf32>
    %436 = arith.addf %433, %435 : vector<2x128xf32>
    %437 = arith.index_cast %c3_i32_120 : i32 to index
    %c0_137 = arith.constant 0 : index
    %c0_138 = arith.constant 0 : index
    %438 = vector.load %arg8[%437, %c0_137, %c0_138] : memref<8x2x128xf32, #tpu.memory_space<vmem>>, vector<1x2x128xf32>
    %439 = vector.shape_cast %438 : vector<1x2x128xf32> to vector<2x128xf32>
    %440 = vector.shape_cast %436 : vector<2x128xf32> to vector<1x2x128xf32>
    tpu.vector_store %arg8[%437, %c0_137, %c0_138], %440 {strides = array<i32>} : memref<8x2x128xf32, #tpu.memory_space<vmem>>, vector<1x2x128xf32>,
    %cst_139 = arith.constant dense<0xFF800000> : vector<2xf32>
    %441 = vector.multi_reduction <maximumf>, %436, %cst_139 [1] : vector<2x128xf32> to vector<2xf32>
    %442 = vector.shape_cast %441 : vector<2xf32> to vector<2x1xf32>
    %443 = vector.broadcast %442 : vector<2x1xf32> to vector<2x128xf32>
    %444 = arith.cmpf oeq, %436, %443 : vector<2x128xf32>
    %c128_i32_140 = arith.constant 128 : i32
    %445 = vector.broadcast %c128_i32_140 : i32 to vector<2x128xi32>
    %446 = arith.select %444, %263, %445 : vector<2x128xi1>, vector<2x128xi32>
    %cst_141 = arith.constant dense<2147483647> : vector<2xi32>
    %447 = vector.multi_reduction <minsi>, %446, %cst_141 [1] : vector<2x128xi32> to vector<2xi32>
    %448 = vector.shape_cast %447 : vector<2xi32> to vector<2x1xi32>
    %449 = arith.index_cast %c3_i32_120 : i32 to index
    %c0_142 = arith.constant 0 : index
    %c0_143 = arith.constant 0 : index
    %450 = vector.load %arg2[%449, %c0_142, %c0_143] : memref<8x2x1xi32, #tpu.memory_space<vmem>>, vector<1x2x1xi32>
    %451 = vector.shape_cast %450 : vector<1x2x1xi32> to vector<2x1xi32>
    %c0_i32_144 = arith.constant 0 : i32
    %452 = vector.broadcast %c0_i32_144 : i32 to vector<2x1xi32>
    %453 = arith.cmpi sge, %451, %452 : vector<2x1xi32>
    %454 = arith.select %453, %451, %448 : vector<2x1xi1>, vector<2x1xi32>
    %455 = vector.broadcast %454 : vector<2x1xi32> to vector<2x16xi32>
    %456 = arith.cmpi eq, %262, %455 : vector<2x16xi32>
    %457 = arith.extui %456 : vector<2x16xi1> to vector<2x16xi32>
    %458 = arith.sitofp %457 : vector<2x16xi32> to vector<2x16xf32>
    %459 = arith.truncf %458 : vector<2x16xf32> to vector<2x16xbf16>
    %c4_i32_145 = arith.constant 4 : i32
    %c0_146 = arith.constant 0 : index
    %c0_147 = arith.constant 0 : index
    %460 = vector.load %arg3[%c0_146, %c0_147] : memref<16x128xbf16, #tpu.memory_space<vmem>>, vector<16x128xbf16>
    %cst_148 = arith.constant dense<0.000000e+00> : vector<2x128xf32>
    %461 = tpu.matmul %459, %460, %cst_148 {dimension_numbers = #tpu.dot_dimension_numbers<[1], [0], [0], [1], [0, 0, 1, 1], [], []>} : vector<2x16xbf16>, vector<16x128xbf16>, vector<2x128xf32> -> vector<2x128xf32>
    %462 = arith.truncf %430 : vector<2x32xf32> to vector<2x32xbf16>
    %c0_149 = arith.constant 0 : index
    %c0_150 = arith.constant 0 : index
    %463 = vector.load %arg4[%c0_149, %c0_150] : memref<32x128xbf16, #tpu.memory_space<vmem>>, vector<32x128xbf16>
    %cst_151 = arith.constant dense<0.000000e+00> : vector<2x128xf32>
    %464 = tpu.matmul %462, %463, %cst_151 {dimension_numbers = #tpu.dot_dimension_numbers<[1], [0], [0], [1], [0, 0, 1, 1], [], []>} : vector<2x32xbf16>, vector<32x128xbf16>, vector<2x128xf32> -> vector<2x128xf32>
    %465 = arith.addf %461, %464 : vector<2x128xf32>
    %c0_152 = arith.constant 0 : index
    %c0_153 = arith.constant 0 : index
    %466 = vector.load %arg5[%c0_152, %c0_153] : memref<1x128xf32, #tpu.memory_space<vmem>>, vector<1x128xf32>
    %467 = vector.broadcast %466 : vector<1x128xf32> to vector<2x128xf32>
    %468 = arith.addf %465, %467 : vector<2x128xf32>
    %469 = vector.extract_strided_slice %468 {offsets = [0, 0], sizes = [2, 32], strides = [1, 1]} : vector<2x128xf32> to vector<2x32xf32>
    %470 = arith.negf %469 : vector<2x32xf32>
    %471 = math.exp %470 : vector<2x32xf32>
    %cst_154 = arith.constant 1.000000e+00 : f32
    %472 = vector.broadcast %cst_154 : f32 to vector<2x32xf32>
    %473 = arith.addf %472, %471 : vector<2x32xf32>
    %474 = arith.divf %472, %473 : vector<2x32xf32>
    %475 = vector.extract_strided_slice %468 {offsets = [0, 32], sizes = [2, 32], strides = [1, 1]} : vector<2x128xf32> to vector<2x32xf32>
    %476 = arith.negf %475 : vector<2x32xf32>
    %477 = math.exp %476 : vector<2x32xf32>
    %cst_155 = arith.constant 1.000000e+00 : f32
    %478 = vector.broadcast %cst_155 : f32 to vector<2x32xf32>
    %479 = arith.addf %478, %477 : vector<2x32xf32>
    %480 = arith.divf %478, %479 : vector<2x32xf32>
    %481 = vector.extract_strided_slice %468 {offsets = [0, 64], sizes = [2, 32], strides = [1, 1]} : vector<2x128xf32> to vector<2x32xf32>
    %482 = math.tanh %481 : vector<2x32xf32>
    %483 = vector.extract_strided_slice %468 {offsets = [0, 96], sizes = [2, 32], strides = [1, 1]} : vector<2x128xf32> to vector<2x32xf32>
    %484 = arith.negf %483 : vector<2x32xf32>
    %485 = math.exp %484 : vector<2x32xf32>
    %cst_156 = arith.constant 1.000000e+00 : f32
    %486 = vector.broadcast %cst_156 : f32 to vector<2x32xf32>
    %487 = arith.addf %486, %485 : vector<2x32xf32>
    %488 = arith.divf %486, %487 : vector<2x32xf32>
    %489 = arith.mulf %480, %428 : vector<2x32xf32>
    %490 = arith.mulf %474, %482 : vector<2x32xf32>
    %491 = arith.addf %489, %490 : vector<2x32xf32>
    %492 = math.tanh %491 : vector<2x32xf32>
    %493 = arith.mulf %488, %492 : vector<2x32xf32>
    %494 = arith.truncf %493 : vector<2x32xf32> to vector<2x32xbf16>
    %c0_157 = arith.constant 0 : index
    %c0_158 = arith.constant 0 : index
    %495 = vector.load %arg6[%c0_157, %c0_158] : memref<32x128xbf16, #tpu.memory_space<vmem>>, vector<32x128xbf16>
    %cst_159 = arith.constant dense<0.000000e+00> : vector<2x128xf32>
    %496 = tpu.matmul %494, %495, %cst_159 {dimension_numbers = #tpu.dot_dimension_numbers<[1], [0], [0], [1], [0, 0, 1, 1], [], []>} : vector<2x32xbf16>, vector<32x128xbf16>, vector<2x128xf32> -> vector<2x128xf32>
    %c0_160 = arith.constant 0 : index
    %c0_161 = arith.constant 0 : index
    %497 = vector.load %arg7[%c0_160, %c0_161] : memref<1x128xf32, #tpu.memory_space<vmem>>, vector<1x128xf32>
    %498 = vector.broadcast %497 : vector<1x128xf32> to vector<2x128xf32>
    %499 = arith.addf %496, %498 : vector<2x128xf32>
    %500 = arith.index_cast %c4_i32_145 : i32 to index
    %c0_162 = arith.constant 0 : index
    %c0_163 = arith.constant 0 : index
    %501 = vector.load %arg8[%500, %c0_162, %c0_163] : memref<8x2x128xf32, #tpu.memory_space<vmem>>, vector<1x2x128xf32>
    %502 = vector.shape_cast %501 : vector<1x2x128xf32> to vector<2x128xf32>
    %503 = vector.shape_cast %499 : vector<2x128xf32> to vector<1x2x128xf32>
    tpu.vector_store %arg8[%500, %c0_162, %c0_163], %503 {strides = array<i32>} : memref<8x2x128xf32, #tpu.memory_space<vmem>>, vector<1x2x128xf32>,
    %cst_164 = arith.constant dense<0xFF800000> : vector<2xf32>
    %504 = vector.multi_reduction <maximumf>, %499, %cst_164 [1] : vector<2x128xf32> to vector<2xf32>
    %505 = vector.shape_cast %504 : vector<2xf32> to vector<2x1xf32>
    %506 = vector.broadcast %505 : vector<2x1xf32> to vector<2x128xf32>
    %507 = arith.cmpf oeq, %499, %506 : vector<2x128xf32>
    %c128_i32_165 = arith.constant 128 : i32
    %508 = vector.broadcast %c128_i32_165 : i32 to vector<2x128xi32>
    %509 = arith.select %507, %263, %508 : vector<2x128xi1>, vector<2x128xi32>
    %cst_166 = arith.constant dense<2147483647> : vector<2xi32>
    %510 = vector.multi_reduction <minsi>, %509, %cst_166 [1] : vector<2x128xi32> to vector<2xi32>
    %511 = vector.shape_cast %510 : vector<2xi32> to vector<2x1xi32>
    %512 = arith.index_cast %c4_i32_145 : i32 to index
    %c0_167 = arith.constant 0 : index
    %c0_168 = arith.constant 0 : index
    %513 = vector.load %arg2[%512, %c0_167, %c0_168] : memref<8x2x1xi32, #tpu.memory_space<vmem>>, vector<1x2x1xi32>
    %514 = vector.shape_cast %513 : vector<1x2x1xi32> to vector<2x1xi32>
    %c0_i32_169 = arith.constant 0 : i32
    %515 = vector.broadcast %c0_i32_169 : i32 to vector<2x1xi32>
    %516 = arith.cmpi sge, %514, %515 : vector<2x1xi32>
    %517 = arith.select %516, %514, %511 : vector<2x1xi1>, vector<2x1xi32>
    %518 = vector.broadcast %517 : vector<2x1xi32> to vector<2x16xi32>
    %519 = arith.cmpi eq, %262, %518 : vector<2x16xi32>
    %520 = arith.extui %519 : vector<2x16xi1> to vector<2x16xi32>
    %521 = arith.sitofp %520 : vector<2x16xi32> to vector<2x16xf32>
    %522 = arith.truncf %521 : vector<2x16xf32> to vector<2x16xbf16>
    %c5_i32_170 = arith.constant 5 : i32
    %c0_171 = arith.constant 0 : index
    %c0_172 = arith.constant 0 : index
    %523 = vector.load %arg3[%c0_171, %c0_172] : memref<16x128xbf16, #tpu.memory_space<vmem>>, vector<16x128xbf16>
    %cst_173 = arith.constant dense<0.000000e+00> : vector<2x128xf32>
    %524 = tpu.matmul %522, %523, %cst_173 {dimension_numbers = #tpu.dot_dimension_numbers<[1], [0], [0], [1], [0, 0, 1, 1], [], []>} : vector<2x16xbf16>, vector<16x128xbf16>, vector<2x128xf32> -> vector<2x128xf32>
    %525 = arith.truncf %493 : vector<2x32xf32> to vector<2x32xbf16>
    %c0_174 = arith.constant 0 : index
    %c0_175 = arith.constant 0 : index
    %526 = vector.load %arg4[%c0_174, %c0_175] : memref<32x128xbf16, #tpu.memory_space<vmem>>, vector<32x128xbf16>
    %cst_176 = arith.constant dense<0.000000e+00> : vector<2x128xf32>
    %527 = tpu.matmul %525, %526, %cst_176 {dimension_numbers = #tpu.dot_dimension_numbers<[1], [0], [0], [1], [0, 0, 1, 1], [], []>} : vector<2x32xbf16>, vector<32x128xbf16>, vector<2x128xf32> -> vector<2x128xf32>
    %528 = arith.addf %524, %527 : vector<2x128xf32>
    %c0_177 = arith.constant 0 : index
    %c0_178 = arith.constant 0 : index
    %529 = vector.load %arg5[%c0_177, %c0_178] : memref<1x128xf32, #tpu.memory_space<vmem>>, vector<1x128xf32>
    %530 = vector.broadcast %529 : vector<1x128xf32> to vector<2x128xf32>
    %531 = arith.addf %528, %530 : vector<2x128xf32>
    %532 = vector.extract_strided_slice %531 {offsets = [0, 0], sizes = [2, 32], strides = [1, 1]} : vector<2x128xf32> to vector<2x32xf32>
    %533 = arith.negf %532 : vector<2x32xf32>
    %534 = math.exp %533 : vector<2x32xf32>
    %cst_179 = arith.constant 1.000000e+00 : f32
    %535 = vector.broadcast %cst_179 : f32 to vector<2x32xf32>
    %536 = arith.addf %535, %534 : vector<2x32xf32>
    %537 = arith.divf %535, %536 : vector<2x32xf32>
    %538 = vector.extract_strided_slice %531 {offsets = [0, 32], sizes = [2, 32], strides = [1, 1]} : vector<2x128xf32> to vector<2x32xf32>
    %539 = arith.negf %538 : vector<2x32xf32>
    %540 = math.exp %539 : vector<2x32xf32>
    %cst_180 = arith.constant 1.000000e+00 : f32
    %541 = vector.broadcast %cst_180 : f32 to vector<2x32xf32>
    %542 = arith.addf %541, %540 : vector<2x32xf32>
    %543 = arith.divf %541, %542 : vector<2x32xf32>
    %544 = vector.extract_strided_slice %531 {offsets = [0, 64], sizes = [2, 32], strides = [1, 1]} : vector<2x128xf32> to vector<2x32xf32>
    %545 = math.tanh %544 : vector<2x32xf32>
    %546 = vector.extract_strided_slice %531 {offsets = [0, 96], sizes = [2, 32], strides = [1, 1]} : vector<2x128xf32> to vector<2x32xf32>
    %547 = arith.negf %546 : vector<2x32xf32>
    %548 = math.exp %547 : vector<2x32xf32>
    %cst_181 = arith.constant 1.000000e+00 : f32
    %549 = vector.broadcast %cst_181 : f32 to vector<2x32xf32>
    %550 = arith.addf %549, %548 : vector<2x32xf32>
    %551 = arith.divf %549, %550 : vector<2x32xf32>
    %552 = arith.mulf %543, %491 : vector<2x32xf32>
    %553 = arith.mulf %537, %545 : vector<2x32xf32>
    %554 = arith.addf %552, %553 : vector<2x32xf32>
    %555 = math.tanh %554 : vector<2x32xf32>
    %556 = arith.mulf %551, %555 : vector<2x32xf32>
    %557 = arith.truncf %556 : vector<2x32xf32> to vector<2x32xbf16>
    %c0_182 = arith.constant 0 : index
    %c0_183 = arith.constant 0 : index
    %558 = vector.load %arg6[%c0_182, %c0_183] : memref<32x128xbf16, #tpu.memory_space<vmem>>, vector<32x128xbf16>
    %cst_184 = arith.constant dense<0.000000e+00> : vector<2x128xf32>
    %559 = tpu.matmul %557, %558, %cst_184 {dimension_numbers = #tpu.dot_dimension_numbers<[1], [0], [0], [1], [0, 0, 1, 1], [], []>} : vector<2x32xbf16>, vector<32x128xbf16>, vector<2x128xf32> -> vector<2x128xf32>
    %c0_185 = arith.constant 0 : index
    %c0_186 = arith.constant 0 : index
    %560 = vector.load %arg7[%c0_185, %c0_186] : memref<1x128xf32, #tpu.memory_space<vmem>>, vector<1x128xf32>
    %561 = vector.broadcast %560 : vector<1x128xf32> to vector<2x128xf32>
    %562 = arith.addf %559, %561 : vector<2x128xf32>
    %563 = arith.index_cast %c5_i32_170 : i32 to index
    %c0_187 = arith.constant 0 : index
    %c0_188 = arith.constant 0 : index
    %564 = vector.load %arg8[%563, %c0_187, %c0_188] : memref<8x2x128xf32, #tpu.memory_space<vmem>>, vector<1x2x128xf32>
    %565 = vector.shape_cast %564 : vector<1x2x128xf32> to vector<2x128xf32>
    %566 = vector.shape_cast %562 : vector<2x128xf32> to vector<1x2x128xf32>
    tpu.vector_store %arg8[%563, %c0_187, %c0_188], %566 {strides = array<i32>} : memref<8x2x128xf32, #tpu.memory_space<vmem>>, vector<1x2x128xf32>,
    %cst_189 = arith.constant dense<0xFF800000> : vector<2xf32>
    %567 = vector.multi_reduction <maximumf>, %562, %cst_189 [1] : vector<2x128xf32> to vector<2xf32>
    %568 = vector.shape_cast %567 : vector<2xf32> to vector<2x1xf32>
    %569 = vector.broadcast %568 : vector<2x1xf32> to vector<2x128xf32>
    %570 = arith.cmpf oeq, %562, %569 : vector<2x128xf32>
    %c128_i32_190 = arith.constant 128 : i32
    %571 = vector.broadcast %c128_i32_190 : i32 to vector<2x128xi32>
    %572 = arith.select %570, %263, %571 : vector<2x128xi1>, vector<2x128xi32>
    %cst_191 = arith.constant dense<2147483647> : vector<2xi32>
    %573 = vector.multi_reduction <minsi>, %572, %cst_191 [1] : vector<2x128xi32> to vector<2xi32>
    %574 = vector.shape_cast %573 : vector<2xi32> to vector<2x1xi32>
    %575 = arith.index_cast %c5_i32_170 : i32 to index
    %c0_192 = arith.constant 0 : index
    %c0_193 = arith.constant 0 : index
    %576 = vector.load %arg2[%575, %c0_192, %c0_193] : memref<8x2x1xi32, #tpu.memory_space<vmem>>, vector<1x2x1xi32>
    %577 = vector.shape_cast %576 : vector<1x2x1xi32> to vector<2x1xi32>
    %c0_i32_194 = arith.constant 0 : i32
    %578 = vector.broadcast %c0_i32_194 : i32 to vector<2x1xi32>
    %579 = arith.cmpi sge, %577, %578 : vector<2x1xi32>
    %580 = arith.select %579, %577, %574 : vector<2x1xi1>, vector<2x1xi32>
    %581 = vector.broadcast %580 : vector<2x1xi32> to vector<2x16xi32>
    %582 = arith.cmpi eq, %262, %581 : vector<2x16xi32>
    %583 = arith.extui %582 : vector<2x16xi1> to vector<2x16xi32>
    %584 = arith.sitofp %583 : vector<2x16xi32> to vector<2x16xf32>
    %585 = arith.truncf %584 : vector<2x16xf32> to vector<2x16xbf16>
    %c6_i32_195 = arith.constant 6 : i32
    %c0_196 = arith.constant 0 : index
    %c0_197 = arith.constant 0 : index
    %586 = vector.load %arg3[%c0_196, %c0_197] : memref<16x128xbf16, #tpu.memory_space<vmem>>, vector<16x128xbf16>
    %cst_198 = arith.constant dense<0.000000e+00> : vector<2x128xf32>
    %587 = tpu.matmul %585, %586, %cst_198 {dimension_numbers = #tpu.dot_dimension_numbers<[1], [0], [0], [1], [0, 0, 1, 1], [], []>} : vector<2x16xbf16>, vector<16x128xbf16>, vector<2x128xf32> -> vector<2x128xf32>
    %588 = arith.truncf %556 : vector<2x32xf32> to vector<2x32xbf16>
    %c0_199 = arith.constant 0 : index
    %c0_200 = arith.constant 0 : index
    %589 = vector.load %arg4[%c0_199, %c0_200] : memref<32x128xbf16, #tpu.memory_space<vmem>>, vector<32x128xbf16>
    %cst_201 = arith.constant dense<0.000000e+00> : vector<2x128xf32>
    %590 = tpu.matmul %588, %589, %cst_201 {dimension_numbers = #tpu.dot_dimension_numbers<[1], [0], [0], [1], [0, 0, 1, 1], [], []>} : vector<2x32xbf16>, vector<32x128xbf16>, vector<2x128xf32> -> vector<2x128xf32>
    %591 = arith.addf %587, %590 : vector<2x128xf32>
    %c0_202 = arith.constant 0 : index
    %c0_203 = arith.constant 0 : index
    %592 = vector.load %arg5[%c0_202, %c0_203] : memref<1x128xf32, #tpu.memory_space<vmem>>, vector<1x128xf32>
    %593 = vector.broadcast %592 : vector<1x128xf32> to vector<2x128xf32>
    %594 = arith.addf %591, %593 : vector<2x128xf32>
    %595 = vector.extract_strided_slice %594 {offsets = [0, 0], sizes = [2, 32], strides = [1, 1]} : vector<2x128xf32> to vector<2x32xf32>
    %596 = arith.negf %595 : vector<2x32xf32>
    %597 = math.exp %596 : vector<2x32xf32>
    %cst_204 = arith.constant 1.000000e+00 : f32
    %598 = vector.broadcast %cst_204 : f32 to vector<2x32xf32>
    %599 = arith.addf %598, %597 : vector<2x32xf32>
    %600 = arith.divf %598, %599 : vector<2x32xf32>
    %601 = vector.extract_strided_slice %594 {offsets = [0, 32], sizes = [2, 32], strides = [1, 1]} : vector<2x128xf32> to vector<2x32xf32>
    %602 = arith.negf %601 : vector<2x32xf32>
    %603 = math.exp %602 : vector<2x32xf32>
    %cst_205 = arith.constant 1.000000e+00 : f32
    %604 = vector.broadcast %cst_205 : f32 to vector<2x32xf32>
    %605 = arith.addf %604, %603 : vector<2x32xf32>
    %606 = arith.divf %604, %605 : vector<2x32xf32>
    %607 = vector.extract_strided_slice %594 {offsets = [0, 64], sizes = [2, 32], strides = [1, 1]} : vector<2x128xf32> to vector<2x32xf32>
    %608 = math.tanh %607 : vector<2x32xf32>
    %609 = vector.extract_strided_slice %594 {offsets = [0, 96], sizes = [2, 32], strides = [1, 1]} : vector<2x128xf32> to vector<2x32xf32>
    %610 = arith.negf %609 : vector<2x32xf32>
    %611 = math.exp %610 : vector<2x32xf32>
    %cst_206 = arith.constant 1.000000e+00 : f32
    %612 = vector.broadcast %cst_206 : f32 to vector<2x32xf32>
    %613 = arith.addf %612, %611 : vector<2x32xf32>
    %614 = arith.divf %612, %613 : vector<2x32xf32>
    %615 = arith.mulf %606, %554 : vector<2x32xf32>
    %616 = arith.mulf %600, %608 : vector<2x32xf32>
    %617 = arith.addf %615, %616 : vector<2x32xf32>
    %618 = math.tanh %617 : vector<2x32xf32>
    %619 = arith.mulf %614, %618 : vector<2x32xf32>
    %620 = arith.truncf %619 : vector<2x32xf32> to vector<2x32xbf16>
    %c0_207 = arith.constant 0 : index
    %c0_208 = arith.constant 0 : index
    %621 = vector.load %arg6[%c0_207, %c0_208] : memref<32x128xbf16, #tpu.memory_space<vmem>>, vector<32x128xbf16>
    %cst_209 = arith.constant dense<0.000000e+00> : vector<2x128xf32>
    %622 = tpu.matmul %620, %621, %cst_209 {dimension_numbers = #tpu.dot_dimension_numbers<[1], [0], [0], [1], [0, 0, 1, 1], [], []>} : vector<2x32xbf16>, vector<32x128xbf16>, vector<2x128xf32> -> vector<2x128xf32>
    %c0_210 = arith.constant 0 : index
    %c0_211 = arith.constant 0 : index
    %623 = vector.load %arg7[%c0_210, %c0_211] : memref<1x128xf32, #tpu.memory_space<vmem>>, vector<1x128xf32>
    %624 = vector.broadcast %623 : vector<1x128xf32> to vector<2x128xf32>
    %625 = arith.addf %622, %624 : vector<2x128xf32>
    %626 = arith.index_cast %c6_i32_195 : i32 to index
    %c0_212 = arith.constant 0 : index
    %c0_213 = arith.constant 0 : index
    %627 = vector.load %arg8[%626, %c0_212, %c0_213] : memref<8x2x128xf32, #tpu.memory_space<vmem>>, vector<1x2x128xf32>
    %628 = vector.shape_cast %627 : vector<1x2x128xf32> to vector<2x128xf32>
    %629 = vector.shape_cast %625 : vector<2x128xf32> to vector<1x2x128xf32>
    tpu.vector_store %arg8[%626, %c0_212, %c0_213], %629 {strides = array<i32>} : memref<8x2x128xf32, #tpu.memory_space<vmem>>, vector<1x2x128xf32>,
    %cst_214 = arith.constant dense<0xFF800000> : vector<2xf32>
    %630 = vector.multi_reduction <maximumf>, %625, %cst_214 [1] : vector<2x128xf32> to vector<2xf32>
    %631 = vector.shape_cast %630 : vector<2xf32> to vector<2x1xf32>
    %632 = vector.broadcast %631 : vector<2x1xf32> to vector<2x128xf32>
    %633 = arith.cmpf oeq, %625, %632 : vector<2x128xf32>
    %c128_i32_215 = arith.constant 128 : i32
    %634 = vector.broadcast %c128_i32_215 : i32 to vector<2x128xi32>
    %635 = arith.select %633, %263, %634 : vector<2x128xi1>, vector<2x128xi32>
    %cst_216 = arith.constant dense<2147483647> : vector<2xi32>
    %636 = vector.multi_reduction <minsi>, %635, %cst_216 [1] : vector<2x128xi32> to vector<2xi32>
    %637 = vector.shape_cast %636 : vector<2xi32> to vector<2x1xi32>
    %638 = arith.index_cast %c6_i32_195 : i32 to index
    %c0_217 = arith.constant 0 : index
    %c0_218 = arith.constant 0 : index
    %639 = vector.load %arg2[%638, %c0_217, %c0_218] : memref<8x2x1xi32, #tpu.memory_space<vmem>>, vector<1x2x1xi32>
    %640 = vector.shape_cast %639 : vector<1x2x1xi32> to vector<2x1xi32>
    %c0_i32_219 = arith.constant 0 : i32
    %641 = vector.broadcast %c0_i32_219 : i32 to vector<2x1xi32>
    %642 = arith.cmpi sge, %640, %641 : vector<2x1xi32>
    %643 = arith.select %642, %640, %637 : vector<2x1xi1>, vector<2x1xi32>
    %644 = vector.broadcast %643 : vector<2x1xi32> to vector<2x16xi32>
    %645 = arith.cmpi eq, %262, %644 : vector<2x16xi32>
    %646 = arith.extui %645 : vector<2x16xi1> to vector<2x16xi32>
    %647 = arith.sitofp %646 : vector<2x16xi32> to vector<2x16xf32>
    %648 = arith.truncf %647 : vector<2x16xf32> to vector<2x16xbf16>
    %c7_i32_220 = arith.constant 7 : i32
    %c0_221 = arith.constant 0 : index
    %c0_222 = arith.constant 0 : index
    %649 = vector.load %arg3[%c0_221, %c0_222] : memref<16x128xbf16, #tpu.memory_space<vmem>>, vector<16x128xbf16>
    %cst_223 = arith.constant dense<0.000000e+00> : vector<2x128xf32>
    %650 = tpu.matmul %648, %649, %cst_223 {dimension_numbers = #tpu.dot_dimension_numbers<[1], [0], [0], [1], [0, 0, 1, 1], [], []>} : vector<2x16xbf16>, vector<16x128xbf16>, vector<2x128xf32> -> vector<2x128xf32>
    %651 = arith.truncf %619 : vector<2x32xf32> to vector<2x32xbf16>
    %c0_224 = arith.constant 0 : index
    %c0_225 = arith.constant 0 : index
    %652 = vector.load %arg4[%c0_224, %c0_225] : memref<32x128xbf16, #tpu.memory_space<vmem>>, vector<32x128xbf16>
    %cst_226 = arith.constant dense<0.000000e+00> : vector<2x128xf32>
    %653 = tpu.matmul %651, %652, %cst_226 {dimension_numbers = #tpu.dot_dimension_numbers<[1], [0], [0], [1], [0, 0, 1, 1], [], []>} : vector<2x32xbf16>, vector<32x128xbf16>, vector<2x128xf32> -> vector<2x128xf32>
    %654 = arith.addf %650, %653 : vector<2x128xf32>
    %c0_227 = arith.constant 0 : index
    %c0_228 = arith.constant 0 : index
    %655 = vector.load %arg5[%c0_227, %c0_228] : memref<1x128xf32, #tpu.memory_space<vmem>>, vector<1x128xf32>
    %656 = vector.broadcast %655 : vector<1x128xf32> to vector<2x128xf32>
    %657 = arith.addf %654, %656 : vector<2x128xf32>
    %658 = vector.extract_strided_slice %657 {offsets = [0, 0], sizes = [2, 32], strides = [1, 1]} : vector<2x128xf32> to vector<2x32xf32>
    %659 = arith.negf %658 : vector<2x32xf32>
    %660 = math.exp %659 : vector<2x32xf32>
    %cst_229 = arith.constant 1.000000e+00 : f32
    %661 = vector.broadcast %cst_229 : f32 to vector<2x32xf32>
    %662 = arith.addf %661, %660 : vector<2x32xf32>
    %663 = arith.divf %661, %662 : vector<2x32xf32>
    %664 = vector.extract_strided_slice %657 {offsets = [0, 32], sizes = [2, 32], strides = [1, 1]} : vector<2x128xf32> to vector<2x32xf32>
    %665 = arith.negf %664 : vector<2x32xf32>
    %666 = math.exp %665 : vector<2x32xf32>
    %cst_230 = arith.constant 1.000000e+00 : f32
    %667 = vector.broadcast %cst_230 : f32 to vector<2x32xf32>
    %668 = arith.addf %667, %666 : vector<2x32xf32>
    %669 = arith.divf %667, %668 : vector<2x32xf32>
    %670 = vector.extract_strided_slice %657 {offsets = [0, 64], sizes = [2, 32], strides = [1, 1]} : vector<2x128xf32> to vector<2x32xf32>
    %671 = math.tanh %670 : vector<2x32xf32>
    %672 = vector.extract_strided_slice %657 {offsets = [0, 96], sizes = [2, 32], strides = [1, 1]} : vector<2x128xf32> to vector<2x32xf32>
    %673 = arith.negf %672 : vector<2x32xf32>
    %674 = math.exp %673 : vector<2x32xf32>
    %cst_231 = arith.constant 1.000000e+00 : f32
    %675 = vector.broadcast %cst_231 : f32 to vector<2x32xf32>
    %676 = arith.addf %675, %674 : vector<2x32xf32>
    %677 = arith.divf %675, %676 : vector<2x32xf32>
    %678 = arith.mulf %669, %617 : vector<2x32xf32>
    %679 = arith.mulf %663, %671 : vector<2x32xf32>
    %680 = arith.addf %678, %679 : vector<2x32xf32>
    %681 = math.tanh %680 : vector<2x32xf32>
    %682 = arith.mulf %677, %681 : vector<2x32xf32>
    %683 = arith.truncf %682 : vector<2x32xf32> to vector<2x32xbf16>
    %c0_232 = arith.constant 0 : index
    %c0_233 = arith.constant 0 : index
    %684 = vector.load %arg6[%c0_232, %c0_233] : memref<32x128xbf16, #tpu.memory_space<vmem>>, vector<32x128xbf16>
    %cst_234 = arith.constant dense<0.000000e+00> : vector<2x128xf32>
    %685 = tpu.matmul %683, %684, %cst_234 {dimension_numbers = #tpu.dot_dimension_numbers<[1], [0], [0], [1], [0, 0, 1, 1], [], []>} : vector<2x32xbf16>, vector<32x128xbf16>, vector<2x128xf32> -> vector<2x128xf32>
    %c0_235 = arith.constant 0 : index
    %c0_236 = arith.constant 0 : index
    %686 = vector.load %arg7[%c0_235, %c0_236] : memref<1x128xf32, #tpu.memory_space<vmem>>, vector<1x128xf32>
    %687 = vector.broadcast %686 : vector<1x128xf32> to vector<2x128xf32>
    %688 = arith.addf %685, %687 : vector<2x128xf32>
    %689 = arith.index_cast %c7_i32_220 : i32 to index
    %c0_237 = arith.constant 0 : index
    %c0_238 = arith.constant 0 : index
    %690 = vector.load %arg8[%689, %c0_237, %c0_238] : memref<8x2x128xf32, #tpu.memory_space<vmem>>, vector<1x2x128xf32>
    %691 = vector.shape_cast %690 : vector<1x2x128xf32> to vector<2x128xf32>
    %692 = vector.shape_cast %688 : vector<2x128xf32> to vector<1x2x128xf32>
    tpu.vector_store %arg8[%689, %c0_237, %c0_238], %692 {strides = array<i32>} : memref<8x2x128xf32, #tpu.memory_space<vmem>>, vector<1x2x128xf32>,
    %cst_239 = arith.constant dense<0xFF800000> : vector<2xf32>
    %693 = vector.multi_reduction <maximumf>, %688, %cst_239 [1] : vector<2x128xf32> to vector<2xf32>
    %694 = vector.shape_cast %693 : vector<2xf32> to vector<2x1xf32>
    %695 = vector.broadcast %694 : vector<2x1xf32> to vector<2x128xf32>
    %696 = arith.cmpf oeq, %688, %695 : vector<2x128xf32>
    %c128_i32_240 = arith.constant 128 : i32
    %697 = vector.broadcast %c128_i32_240 : i32 to vector<2x128xi32>
    %698 = arith.select %696, %263, %697 : vector<2x128xi1>, vector<2x128xi32>
    %cst_241 = arith.constant dense<2147483647> : vector<2xi32>
    %699 = vector.multi_reduction <minsi>, %698, %cst_241 [1] : vector<2x128xi32> to vector<2xi32>
    %700 = vector.shape_cast %699 : vector<2xi32> to vector<2x1xi32>
    %701 = arith.index_cast %c7_i32_220 : i32 to index
    %c0_242 = arith.constant 0 : index
    %c0_243 = arith.constant 0 : index
    %702 = vector.load %arg2[%701, %c0_242, %c0_243] : memref<8x2x1xi32, #tpu.memory_space<vmem>>, vector<1x2x1xi32>
    %703 = vector.shape_cast %702 : vector<1x2x1xi32> to vector<2x1xi32>
    %c0_i32_244 = arith.constant 0 : i32
    %704 = vector.broadcast %c0_i32_244 : i32 to vector<2x1xi32>
    %705 = arith.cmpi sge, %703, %704 : vector<2x1xi32>
    %706 = arith.select %705, %703, %700 : vector<2x1xi1>, vector<2x1xi32>
    %707 = vector.broadcast %706 : vector<2x1xi32> to vector<2x16xi32>
    %708 = arith.cmpi eq, %262, %707 : vector<2x16xi32>
    %709 = arith.extui %708 : vector<2x16xi1> to vector<2x16xi32>
    %710 = arith.sitofp %709 : vector<2x16xi32> to vector<2x16xf32>
    %711 = arith.truncf %710 : vector<2x16xf32> to vector<2x16xbf16>
    %c7_i32_245 = arith.constant 7 : i32
    return
  }
}

</mosaic_0001>

<bundles_post_ra>
// kernel: tpu_custom_call.1
= control target key start
LH: loop header
LB: loop body
LE: loop exit
PB: predicated region body
PF: predicated region fallthrough
CT: control target
= control target key end

     0   :  { %13 = vsyncpa [#allocation3], 0  ;;  %s3518_s0 = inlined_call_operand.vmem [shape: f32[8,2,128], index: 0, kind: input, shape index: {}]   ;;  %s3519_s1 = inlined_call_operand.hbm [shape: bf16[32,128], index: 1, kind: input, shape index: {}]   ;;  %s3520_s2 = inlined_call_operand.vmem [shape: s32[8,2,1], index: 2, kind: input, shape index: {}]   ;;  %s3521_s3 = inlined_call_operand.hbm [shape: bf16[16,128], index: 3, kind: input, shape index: {}]   ;;  %s3522_s4 = inlined_call_operand.hbm [shape: bf16[32,128], index: 4, kind: input, shape index: {}]   ;;  %s3523_s5 = inlined_call_operand.vmem [shape: f32[1,128], index: 5, kind: input, shape index: {}]   ;;  %s3524_s6 = inlined_call_operand.hbm [shape: bf16[32,128], index: 6, kind: input, shape index: {}]   ;;  %s3525_s7 = inlined_call_operand.vmem [shape: f32[1,128], index: 7, kind: input, shape index: {}]   ;;  %s3526_s8 = inlined_call_operand.hbm [shape: f32[8,2,128], index: 8, kind: output, shape index: {}]  }
   0x1   :  { %14 = vsyncpa [#allocation6], 0 }
   0x2   :  { %15 = vsyncpa [#allocation9], 0 }
   0x3   :  { %16 = vsyncpa [#allocation4], 0  ;;  %s3083_s27 = smov [#allocation5]   ;;  %s3084_s29 = smov [#allocation2]  }
   0x4   :  { %s38_s28 = sshll.u32 %s3083_s27, 4  ;;  %s24_s30 = sshll.u32 %s3084_s29, 4  ;;  %s39_s28 = int_to_ptr.vmem [resolvable:$true] %s38_s28  ;;  %s25_s30 = int_to_ptr.vmem [resolvable:$true] %s24_s30 }
   0x5   :  { %s2983_s9 = scalar_lea.vmem %s39_s28, 128  ;;  %p2988_p1 = scmp.lt.s32.totalorder %s39_s28, %s39_s28 }
   0x6   :  { %p2984_p0 = scmp.ne.s32.totalorder %s39_s28, %s2983_s9  ;;  %p2989_p2 = scmp.lt.s32.totalorder %s2983_s9, %s2983_s9 }
   0x8   :  { %p2990_p3 = por %p2989_p2, %p2988_p1 }
   0xa   :  { %p2991_p4 = pnand %p2990_p3, %p2984_p0 }
   0xc   :  { %2994 = shalt.err (!%p2991_p4)
}
   0xd   :  { %s3085_s10 = smov 64   ;;  %s3086_s11 = smov 4  }
   0xe   :  { %44 = dma.hbm_to_vmem [thread:$0]  %s3521_s3, 128, %s39_s28, [#allocation6], %s3085_s10, %s3085_s10, %s3086_s11  }
   0xf   :  { %s3003_s14 = scalar_lea.vmem %s25_s30, 256  ;;  %p3008_p6 = scmp.lt.s32.totalorder %s25_s30, %s25_s30 }
  0x10   :  { %p3004_p5 = scmp.ne.s32.totalorder %s25_s30, %s3003_s14  ;;  %p3009_p7 = scmp.lt.s32.totalorder %s3003_s14, %s3003_s14 }
  0x12   :  { %p3010_p8 = por %p3009_p7, %p3008_p6 }
  0x14   :  { %p3011_p9 = pnand %p3010_p8, %p3004_p5 }
  0x16   :  { %3014 = shalt.err (!%p3011_p9)
}
  0x17   :  { %30 = dma.hbm_to_vmem [thread:$0]  %s3519_s1, 256, %s25_s30, [#allocation3], %s3085_s10, %s3085_s10, %s3086_s11  }
  0x18   :  { %s3087_s17 = smov [#allocation7]   ;;  %s3088_s19 = smov [#allocation8]  }
  0x19   :  { %s50_s18 = sshll.u32 %s3087_s17, 4  ;;  %s64_s20 = sshll.u32 %s3088_s19, 4  ;;  %s51_s18 = int_to_ptr.vmem [resolvable:$true] %s50_s18  ;;  %s65_s20 = int_to_ptr.vmem [resolvable:$true] %s64_s20 }
  0x1a   :  { %s3023_s3 = scalar_lea.vmem %s51_s18, 256  ;;  %p3028_p11 = scmp.lt.s32.totalorder %s51_s18, %s51_s18 }
  0x1b   :  { %p3024_p10 = scmp.ne.s32.totalorder %s51_s18, %s3023_s3  ;;  %p3029_p12 = scmp.lt.s32.totalorder %s3023_s3, %s3023_s3 }
  0x1d   :  { %p3030_p13 = por %p3029_p12, %p3028_p11 }
  0x1f   :  { %p3031_p0 = pnand %p3030_p13, %p3024_p10 }
  0x21   :  { %3034 = shalt.err (!%p3031_p0)
}
  0x22   :  { %56 = dma.hbm_to_vmem [thread:$0]  %s3522_s4, 256, %s51_s18, [#allocation6], %s3085_s10, %s3085_s10, %s3086_s11  }
  0x23   :  { %s3043_s1 = scalar_lea.vmem %s65_s20, 256  ;;  %p3048_p2 = scmp.lt.s32.totalorder %s65_s20, %s65_s20 }
  0x24   :  { %p3044_p1 = scmp.ne.s32.totalorder %s65_s20, %s3043_s1  ;;  %p3049_p3 = scmp.lt.s32.totalorder %s3043_s1, %s3043_s1 }
  0x26   :  { %p3050_p4 = por %p3049_p3, %p3048_p2 }
  0x28   :  { %p3051_p5 = pnand %p3050_p4, %p3044_p1 }
  0x2a   :  { %3054 = shalt.err (!%p3051_p5)
}
  0x2b   :  { %70 = dma.hbm_to_vmem [thread:$0]  %s3524_s6, 256, %s65_s20, [#allocation9], %s3085_s10, %s3085_s10, %s3086_s11  }
  0x2c   :  { %3075 = dma.done.wait [#allocation3], 256  }
  0x2d   :  { %3076 = vsyncadd [#allocation3], 4294967040 }
  0x2e   :  { %3077 = dma.done.wait [#allocation6], 384  }
  0x2f   :  { %3078 = vsyncadd [#allocation6], 4294966912 }
  0x30   :  { %3079 = dma.done.wait [#allocation9], 256  }
  0x31   :  { %3080 = vsyncadd [#allocation9], 4294967040  ;;  %v3089_v0 = vmov 0.0   ;;  %vm3090_vm0 = vmmov 0   ;;  %v3091_v1 = vmov 0   ;;  %v3171_v2 = vld [vmem:[#allocation2 + $0x8] sm:$0xff]  }
  0x32   :  { %2586 = vmatprep.subr.bf16.mxu0 %v3089_v0  ;;  %690 = vst [vmem:[#allocation10] sm:$0x3] %v3089_v0  ;;  %2590 = vmatprep.mubr.msk.bf16.mxu0 %vm3090_vm0, %v3089_v0  ;;  %v3174_v3 = vld [vmem:[#allocation2] sm:$0xff]   ;;  %s3092_s25 = smov 32   ;;  %vm103_vm1 = vcmask 261120   ;;  %vm772_vm3 = vcmask 130048  }
  0x33   :  { %2594 = vmatprep.subr.bf16.mxu1 %v3089_v0  ;;  %2598 = vmatprep.mubr.msk.bf16.mxu1 %vm3090_vm0, %v3089_v0  ;;  %v86_v4 = vld [vmem:[%s3518_s0] sm:$0x3]  ;;  %v2395_v25 = vld [vmem:[%s3518_s0 + $0x2] sm:$0x3]  ;;  %v2398_v46 = vld [vmem:[%s3518_s0 + $0x4] sm:$0x3] }
  0x34   :  { %2816 = vset.pattern.permute.xlu1 %v3091_v1  ;;  %2817 = vset.pattern.permute.xlu0 %v3091_v1  ;;  %vm920_vm4 = vcmask 1041408   ;;  %s3093_s14 = smov [#allocation10]  }
  0x35   :  { %2587 = vmatpush3.bf16.msra.mxu0 %v3171_v2  ;;  %2595 = vmatpush3.bf16.msra.mxu1 %v3171_v2  ;;  %s2378_s15 = sshll.u32 %s3093_s14, 4  ;;  %s2379_s15 = int_to_ptr.vmem [resolvable:$true] %s2378_s15 }
  0x36   :  { %2588 = vmatprep.subr.bf16.mxu0 %v3089_v0  ;;  %2596 = vmatprep.subr.bf16.mxu1 %v3089_v0  ;;  %p3060_p7 = scmp.lt.s32.totalorder %s2379_s15, %s2379_s15 }
  0x39   :  { %2589 = vmatpush3.bf16.msra.mxu0 %v3174_v3  ;;  %2597 = vmatpush3.bf16.msra.mxu1 %v3174_v3 }
  0x3a   :  { %2602 = vmatprep.subr.bf16.mxu0 %v3089_v0  ;;  %2610 = vmatprep.subr.bf16.mxu1 %v3089_v0 }
  0x3c   :  { %2591 = vmatmul.mubr.bf16.vlgmr.msra.gmra.mxu0 %v3091_v1 }
  0x3d   :  { %2603 = vmatpush3.bf16.msra.mxu0 %v3171_v2  ;;  %2606 = vmatprep.mubr.msk.bf16.mxu0 %vm3090_vm0, %v3089_v0 }
  0x3e   :  { %2604 = vmatprep.subr.bf16.mxu0 %v3089_v0 }
  0x41   :  { %2605 = vmatpush3.bf16.msra.mxu0 %v3174_v3 }
  0x42   :  { %2618 = vmatprep.subr.bf16.mxu0 %v3089_v0 }
  0xfc   :  { %v141_v5 = vpop.f32.mrf.mxu0 }
  0xfd   :  { %v147_v6 = vadd.f32 %v141_v5, %v86_v4 }
  0xfe   :  { %v2592_v7 = vpop.f32.mrf.mxu0 }
  0xff   :  { %2855 = vtanh.f32 %v147_v6  ;;  %v2394_v11 = vmul.f32 -1.442695, %v147_v6  ;;  %v2401_v6 = vld [vmem:[%s3518_s0 + $0x6] sm:$0x3] }
 0x100   :  { %v144_v8 = vpop.f32.mrf.mxu0 }
 0x101   :  { %2857 = vpow2.f32 %v2394_v11 }
 0x102   :  { %v2593_v9 = vpop.f32.mrf.mxu0 }
 0x10c   :  { %v2856_v10 = vpop.eup %2855 }
 0x10d   :  { %157 = vrot.lane.b32.xlu0 %v2856_v10, %s3085_s10 }
 0x10e   :  { %v2858_v12 = vpop.eup %2857 }
 0x10f   :  { %v151_v13 = vadd.f32 1.0, %v2858_v12 }
 0x111   :  { %2859 = vrcp.f32 %v151_v13 }
 0x11e   :  { %v2860_v14 = vpop.eup %2859 }
 0x11f   :  { %v155_v17 = vmul.f32 0.0, %v2860_v14 }
 0x17f   :  { %v158_v15 = vpop.permute.xlu0 %157 }
 0x180   :  { %v160_v16 = vmul.f32 %v2860_v14, %v158_v15 }
 0x182   :  { %162 = vrot.lane.b32.xlu0 %v160_v16, %s3092_s25 }
 0x1f4   :  { %v163_v18 = vpop.permute.xlu0 %162 }
 0x1f5   :  { %v165_v19 = vadd.f32 %v163_v18, %v155_v17 }
 0x1f7   :  { %2861 = vtanh.f32 %v165_v19 }
 0x204   :  { %v2862_v20 = vpop.eup %2861 }
 0x205   :  { %168 = vrot.lane.b32.xlu1 %v2862_v20, %s3085_s10 }
 0x277   :  { %v169_v21 = vpop.permute.xlu1 %168 }
 0x278   :  { %v171_v22 = vmul.f32 %v2860_v14, %v169_v21 }
 0x27a   :  { %v174_v23 = vpack.c.bf16 %v171_v22, %v171_v22 }
 0x27c   :  { %176 = vrot.lane.b32.xlu1 %v174_v23, %s3092_s25 }
 0x2ee   :  { %v177_v24 = vpop.permute.xlu1 %176 }
 0x2ef   :  { %2599 = vmatmul.mubr.msk.bf16.vlgmr.msra.gmra.mxu1 %vm103_vm1, %v177_v24 }
 0x2f0   :  { %2611 = vmatpush3.bf16.msra.mxu1 %v3171_v2  ;;  %2614 = vmatprep.mubr.msk.bf16.mxu1 %vm3090_vm0, %v3089_v0 }
 0x2f1   :  { %2612 = vmatprep.subr.bf16.mxu1 %v3089_v0 }
 0x2f4   :  { %2613 = vmatpush3.bf16.msra.mxu1 %v3174_v3 }
 0x2f5   :  { %2626 = vmatprep.subr.bf16.mxu1 %v3089_v0 }
 0x3af   :  { %v215_v26 = vpop.f32.mrf.mxu1 }
 0x3b0   :  { %v221_v27 = vadd.f32 %v2395_v25, %v215_v26 }
 0x3b1   :  { %v2600_v28 = vpop.f32.mrf.mxu1 }
 0x3b2   :  { %2863 = vtanh.f32 %v221_v27  ;;  %v2397_v32 = vmul.f32 -1.442695, %v221_v27  ;;  %v2404_v27 = vld [vmem:[%s3518_s0 + $0x8] sm:$0x3] }
 0x3b3   :  { %v218_v29 = vpop.f32.mrf.mxu1 }
 0x3b4   :  { %2865 = vpow2.f32 %v2397_v32 }
 0x3b5   :  { %v2601_v30 = vpop.f32.mrf.mxu1 }
 0x3bf   :  { %v2864_v31 = vpop.eup %2863 }
 0x3c0   :  { %231 = vrot.lane.b32.xlu0 %v2864_v31, %s3085_s10 }
 0x3c1   :  { %v2866_v33 = vpop.eup %2865 }
 0x3c2   :  { %v225_v34 = vadd.f32 1.0, %v2866_v33 }
 0x3c4   :  { %2867 = vrcp.f32 %v225_v34 }
 0x3d1   :  { %v2868_v35 = vpop.eup %2867 }
 0x3d2   :  { %v229_v38 = vmul.f32 %v2868_v35, %v165_v19 }
 0x432   :  { %v232_v36 = vpop.permute.xlu0 %231 }
 0x433   :  { %v234_v37 = vmul.f32 %v2868_v35, %v232_v36 }
 0x435   :  { %236 = vrot.lane.b32.xlu1 %v234_v37, %s3092_s25 }
 0x4a7   :  { %v237_v39 = vpop.permute.xlu1 %236 }
 0x4a8   :  { %v239_v40 = vadd.f32 %v237_v39, %v229_v38 }
 0x4aa   :  { %2869 = vtanh.f32 %v239_v40 }
 0x4b7   :  { %v2870_v41 = vpop.eup %2869 }
 0x4b8   :  { %242 = vrot.lane.b32.xlu0 %v2870_v41, %s3085_s10 }
 0x52a   :  { %v243_v42 = vpop.permute.xlu0 %242 }
 0x52b   :  { %v245_v43 = vmul.f32 %v2868_v35, %v243_v42 }
 0x52d   :  { %v248_v44 = vpack.c.bf16 %v245_v43, %v245_v43 }
 0x52f   :  { %250 = vrot.lane.b32.xlu1 %v248_v44, %s3092_s25 }
 0x5a1   :  { %v251_v45 = vpop.permute.xlu1 %250 }
 0x5a2   :  { %2607 = vmatmul.mubr.msk.bf16.vlgmr.msra.gmra.mxu0 %vm103_vm1, %v251_v45 }
 0x5a3   :  { %2619 = vmatpush3.bf16.msra.mxu0 %v3171_v2  ;;  %2622 = vmatprep.mubr.msk.bf16.mxu0 %vm3090_vm0, %v3089_v0 }
 0x5a4   :  { %2620 = vmatprep.subr.bf16.mxu0 %v3089_v0 }
 0x5a7   :  { %2621 = vmatpush3.bf16.msra.mxu0 %v3174_v3 }
 0x5a8   :  { %2634 = vmatprep.subr.bf16.mxu0 %v3089_v0 }
 0x662   :  { %v289_v47 = vpop.f32.mrf.mxu0 }
 0x663   :  { %v295_v48 = vadd.f32 %v2398_v46, %v289_v47 }
 0x664   :  { %v2608_v49 = vpop.f32.mrf.mxu0 }
 0x665   :  { %2871 = vtanh.f32 %v295_v48  ;;  %v2400_v53 = vmul.f32 -1.442695, %v295_v48  ;;  %v2407_v48 = vld [vmem:[%s3518_s0 + $0xa] sm:$0x3] }
 0x666   :  { %v292_v50 = vpop.f32.mrf.mxu0 }
 0x667   :  { %2873 = vpow2.f32 %v2400_v53 }
 0x668   :  { %v2609_v51 = vpop.f32.mrf.mxu0 }
 0x672   :  { %v2872_v52 = vpop.eup %2871 }
 0x673   :  { %305 = vrot.lane.b32.xlu0 %v2872_v52, %s3085_s10 }
 0x674   :  { %v2874_v54 = vpop.eup %2873 }
 0x675   :  { %v299_v55 = vadd.f32 1.0, %v2874_v54 }
 0x677   :  { %2875 = vrcp.f32 %v299_v55 }
 0x684   :  { %v2876_v56 = vpop.eup %2875 }
 0x685   :  { %v303_v59 = vmul.f32 %v2876_v56, %v239_v40 }
 0x6e5   :  { %v306_v57 = vpop.permute.xlu0 %305 }
 0x6e6   :  { %v308_v58 = vmul.f32 %v2876_v56, %v306_v57 }
 0x6e8   :  { %310 = vrot.lane.b32.xlu1 %v308_v58, %s3092_s25 }
 0x75a   :  { %v311_v60 = vpop.permute.xlu1 %310 }
 0x75b   :  { %v313_v61 = vadd.f32 %v311_v60, %v303_v59 }
 0x75d   :  { %2877 = vtanh.f32 %v313_v61 }
 0x76a   :  { %v2878_v62 = vpop.eup %2877 }
 0x76b   :  { %316 = vrot.lane.b32.xlu0 %v2878_v62, %s3085_s10 }
 0x7dd   :  { %v317_v63 = vpop.permute.xlu0 %316 }
 0x7de   :  { %v319_v1 = vmul.f32 %v2876_v56, %v317_v63 }
 0x7e0   :  { %v322_v4 = vpack.c.bf16 %v319_v1, %v319_v1 }
 0x7e2   :  { %324 = vrot.lane.b32.xlu1 %v322_v4, %s3092_s25 }
 0x854   :  { %v325_v5 = vpop.permute.xlu1 %324 }
 0x855   :  { %2615 = vmatmul.mubr.msk.bf16.vlgmr.msra.gmra.mxu1 %vm103_vm1, %v325_v5 }
 0x856   :  { %2627 = vmatpush3.bf16.msra.mxu1 %v3171_v2  ;;  %2630 = vmatprep.mubr.msk.bf16.mxu1 %vm3090_vm0, %v3089_v0 }
 0x857   :  { %2628 = vmatprep.subr.bf16.mxu1 %v3089_v0 }
 0x85a   :  { %2629 = vmatpush3.bf16.msra.mxu1 %v3174_v3 }
 0x85b   :  { %2642 = vmatprep.subr.bf16.mxu1 %v3089_v0 }
 0x915   :  { %v363_v7 = vpop.f32.mrf.mxu1 }
 0x916   :  { %v369_v8 = vadd.f32 %v2401_v6, %v363_v7  ;;  %v2410_v6 = vld [vmem:[%s3518_s0 + $0xc] sm:$0x3] }
 0x917   :  { %v2616_v9 = vpop.f32.mrf.mxu1 }
 0x918   :  { %2879 = vtanh.f32 %v369_v8  ;;  %v2403_v13 = vmul.f32 -1.442695, %v369_v8 }
 0x919   :  { %v366_v10 = vpop.f32.mrf.mxu1 }
 0x91a   :  { %2881 = vpow2.f32 %v2403_v13 }
 0x91b   :  { %v2617_v11 = vpop.f32.mrf.mxu1 }
 0x925   :  { %v2880_v12 = vpop.eup %2879 }
 0x926   :  { %379 = vrot.lane.b32.xlu0 %v2880_v12, %s3085_s10 }
 0x927   :  { %v2882_v14 = vpop.eup %2881 }
 0x928   :  { %v373_v15 = vadd.f32 1.0, %v2882_v14 }
 0x92a   :  { %2883 = vrcp.f32 %v373_v15 }
 0x937   :  { %v2884_v16 = vpop.eup %2883 }
 0x938   :  { %v377_v19 = vmul.f32 %v2884_v16, %v313_v61 }
 0x998   :  { %v380_v17 = vpop.permute.xlu0 %379 }
 0x999   :  { %v382_v18 = vmul.f32 %v2884_v16, %v380_v17 }
 0x99b   :  { %384 = vrot.lane.b32.xlu1 %v382_v18, %s3092_s25 }
 0xa0d   :  { %v385_v20 = vpop.permute.xlu1 %384 }
 0xa0e   :  { %v387_v21 = vadd.f32 %v385_v20, %v377_v19 }
 0xa10   :  { %2885 = vtanh.f32 %v387_v21 }
 0xa1d   :  { %v2886_v22 = vpop.eup %2885 }
 0xa1e   :  { %390 = vrot.lane.b32.xlu0 %v2886_v22, %s3085_s10 }
 0xa90   :  { %v391_v23 = vpop.permute.xlu0 %390 }
 0xa91   :  { %v393_v24 = vmul.f32 %v2884_v16, %v391_v23 }
 0xa93   :  { %v396_v25 = vpack.c.bf16 %v393_v24, %v393_v24 }
 0xa95   :  { %398 = vrot.lane.b32.xlu1 %v396_v25, %s3092_s25 }
 0xb07   :  { %v399_v26 = vpop.permute.xlu1 %398 }
 0xb08   :  { %2623 = vmatmul.mubr.msk.bf16.vlgmr.msra.gmra.mxu0 %vm103_vm1, %v399_v26 }
 0xb09   :  { %2635 = vmatpush3.bf16.msra.mxu0 %v3171_v2  ;;  %2638 = vmatprep.mubr.msk.bf16.mxu0 %vm3090_vm0, %v3089_v0 }
 0xb0a   :  { %2636 = vmatprep.subr.bf16.mxu0 %v3089_v0 }
 0xb0d   :  { %2637 = vmatpush3.bf16.msra.mxu0 %v3174_v3 }
 0xb0e   :  { %2650 = vmatprep.subr.bf16.mxu0 %v3089_v0 }
 0xbc8   :  { %v437_v28 = vpop.f32.mrf.mxu0 }
 0xbc9   :  { %v443_v29 = vadd.f32 %v2404_v27, %v437_v28  ;;  %v2413_v27 = vld [vmem:[%s3518_s0 + $0xe] sm:$0x3] }
 0xbca   :  { %v2624_v30 = vpop.f32.mrf.mxu0 }
 0xbcb   :  { %2887 = vtanh.f32 %v443_v29  ;;  %v2406_v34 = vmul.f32 -1.442695, %v443_v29 }
 0xbcc   :  { %v440_v31 = vpop.f32.mrf.mxu0 }
 0xbcd   :  { %2889 = vpow2.f32 %v2406_v34 }
 0xbce   :  { %v2625_v32 = vpop.f32.mrf.mxu0 }
 0xbd8   :  { %v2888_v33 = vpop.eup %2887 }
 0xbd9   :  { %453 = vrot.lane.b32.xlu0 %v2888_v33, %s3085_s10 }
 0xbda   :  { %v2890_v35 = vpop.eup %2889 }
 0xbdb   :  { %v447_v36 = vadd.f32 1.0, %v2890_v35 }
 0xbdd   :  { %2891 = vrcp.f32 %v447_v36 }
 0xbea   :  { %v2892_v37 = vpop.eup %2891 }
 0xbeb   :  { %v451_v40 = vmul.f32 %v2892_v37, %v387_v21 }
 0xc4b   :  { %v454_v38 = vpop.permute.xlu0 %453 }
 0xc4c   :  { %v456_v39 = vmul.f32 %v2892_v37, %v454_v38 }
 0xc4e   :  { %458 = vrot.lane.b32.xlu1 %v456_v39, %s3092_s25 }
 0xcc0   :  { %v459_v41 = vpop.permute.xlu1 %458 }
 0xcc1   :  { %v461_v42 = vadd.f32 %v459_v41, %v451_v40  ;;  %v693_v40 = vld [vmem:[%s3520_s2] sm:$0x3] }
 0xcc3   :  { %2893 = vtanh.f32 %v461_v42 }
 0xcd0   :  { %v2894_v43 = vpop.eup %2893 }
 0xcd1   :  { %464 = vrot.lane.b32.xlu0 %v2894_v43, %s3085_s10 }
 0xd43   :  { %v465_v44 = vpop.permute.xlu0 %464 }
 0xd44   :  { %v467_v45 = vmul.f32 %v2892_v37, %v465_v44  ;;  %v691_v44 = vlaneseq }
 0xd46   :  { %v470_v46 = vpack.c.bf16 %v467_v45, %v467_v45  ;;  %v2820_v45 = vld [vmem:[#allocation5] sm:$0xff]  }
 0xd48   :  { %472 = vrot.lane.b32.xlu1 %v470_v46, %s3092_s25  ;;  %v2821_v46 = vld [vmem:[#allocation7 + $0x8] sm:$0xff]  }
 0xdba   :  { %v473_v47 = vpop.permute.xlu1 %472 }
 0xdbb   :  { %2631 = vmatmul.mubr.msk.bf16.vlgmr.msra.gmra.mxu1 %vm103_vm1, %v473_v47  ;;  %v3287_v47 = vand.u32 127, %v691_v44  ;;  %v2827_v44 = vld [vmem:[#allocation5] sm:$0xff]  }
 0xdbc   :  { %2643 = vmatpush3.bf16.msra.mxu1 %v3171_v2  ;;  %2646 = vmatprep.mubr.msk.bf16.mxu1 %vm3090_vm0, %v3089_v0 }
 0xdbd   :  { %2644 = vmatprep.subr.bf16.mxu1 %v3089_v0 }
 0xdc0   :  { %2645 = vmatpush3.bf16.msra.mxu1 %v3174_v3 }
 0xdc1   :  { %2658 = vmatprep.subr.bf16.mxu1 %v3089_v0 }
 0xe7b   :  { %v511_v49 = vpop.f32.mrf.mxu1 }
 0xe7c   :  { %v517_v50 = vadd.f32 %v2407_v48, %v511_v49  ;;  %v2822_v48 = vld [vmem:[#allocation7] sm:$0xff]  }
 0xe7d   :  { %v2632_v51 = vpop.f32.mrf.mxu1 }
 0xe7e   :  { %2895 = vtanh.f32 %v517_v50  ;;  %v2409_v54 = vmul.f32 -1.442695, %v517_v50 }
 0xe7f   :  { %v514_v52 = vpop.f32.mrf.mxu1 }
 0xe80   :  { %2897 = vpow2.f32 %v2409_v54 }
 0xe81   :  { %v2633_v53 = vpop.f32.mrf.mxu1 }
 0xe8b   :  { %v2896_v2 = vpop.eup %2895 }
 0xe8c   :  { %527 = vrot.lane.b32.xlu0 %v2896_v2, %s3085_s10 }
 0xe8d   :  { %v2898_v55 = vpop.eup %2897 }
 0xe8e   :  { %v521_v56 = vadd.f32 1.0, %v2898_v55 }
 0xe90   :  { %2899 = vrcp.f32 %v521_v56 }
 0xe9d   :  { %v2900_v3 = vpop.eup %2899 }
 0xe9e   :  { %v525_v59 = vmul.f32 %v2900_v3, %v461_v42 }
 0xefe   :  { %v528_v57 = vpop.permute.xlu0 %527 }
 0xeff   :  { %v530_v58 = vmul.f32 %v2900_v3, %v528_v57 }
 0xf01   :  { %532 = vrot.lane.b32.xlu1 %v530_v58, %s3092_s25 }
 0xf73   :  { %v533_v60 = vpop.permute.xlu1 %532 }
 0xf74   :  { %v535_v61 = vadd.f32 %v533_v60, %v525_v59  ;;  %v3305_v60 = vld [vmem:[%s3523_s5] ss:$0 sm:$0xff] }
 0xf76   :  { %2901 = vtanh.f32 %v535_v61 }
 0xf83   :  { %v2902_v62 = vpop.eup %2901 }
 0xf84   :  { %538 = vrot.lane.b32.xlu0 %v2902_v62, %s3085_s10 }
 0xff6   :  { %v539_v63 = vpop.permute.xlu0 %538 }
 0xff7   :  { %v541_v1 = vmul.f32 %v2900_v3, %v539_v63 }
 0xff9   :  { %v544_v4 = vpack.c.bf16 %v541_v1, %v541_v1 }
 0xffb   :  { %546 = vrot.lane.b32.xlu1 %v544_v4, %s3092_s25 }
0x106d   :  { %v547_v5 = vpop.permute.xlu1 %546 }
0x106e   :  { %2639 = vmatmul.mubr.msk.bf16.vlgmr.msra.gmra.mxu0 %vm103_vm1, %v547_v5 }
0x106f   :  { %2654 = vmatprep.mubr.msk.bf16.mxu0 %vm3090_vm0, %v3089_v0  ;;  %2651 = vmatpush3.bf16.msra.mxu0 %v2821_v46  ;;  %v2428_v46 = vld [vmem:[%s3520_s2 + $0x2] sm:$0x3] }
0x1070   :  { %2652 = vmatprep.subr.bf16.mxu0 %v3089_v0  ;;  %vm943_vm7 = vcmp.ge.s32.totalorder %v2428_v46, 0 }
0x1073   :  { %2653 = vmatpush3.bf16.msra.mxu0 %v2822_v48 }
0x1074   :  { %2664 = vmatprep.subr.bf16.mxu0 %v3089_v0 }
0x112e   :  { %v585_v7 = vpop.f32.mrf.mxu0 }
0x112f   :  { %v591_v8 = vadd.f32 %v2410_v6, %v585_v7 }
0x1130   :  { %v2640_v9 = vpop.f32.mrf.mxu0 }
0x1131   :  { %2903 = vtanh.f32 %v591_v8  ;;  %v2412_v13 = vmul.f32 -1.442695, %v591_v8 }
0x1132   :  { %v588_v10 = vpop.f32.mrf.mxu0 }
0x1133   :  { %2905 = vpow2.f32 %v2412_v13 }
0x1134   :  { %v2641_v11 = vpop.f32.mrf.mxu0 }
0x113e   :  { %v2904_v12 = vpop.eup %2903 }
0x113f   :  { %601 = vrot.lane.b32.xlu0 %v2904_v12, %s3085_s10 }
0x1140   :  { %v2906_v14 = vpop.eup %2905 }
0x1141   :  { %v595_v15 = vadd.f32 1.0, %v2906_v14 }
0x1143   :  { %2907 = vrcp.f32 %v595_v15  ;;  %v2823_v15 = vld [vmem:[#allocation8 + $0x8] sm:$0xff]  }
0x1150   :  { %v2908_v16 = vpop.eup %2907 }
0x1151   :  { %v599_v19 = vmul.f32 %v2908_v16, %v535_v61 }
0x11b1   :  { %v602_v17 = vpop.permute.xlu0 %601 }
0x11b2   :  { %v604_v18 = vmul.f32 %v2908_v16, %v602_v17  ;;  %v2825_v17 = vld [vmem:[#allocation8] sm:$0xff]  }
0x11b4   :  { %606 = vrot.lane.b32.xlu1 %v604_v18, %s3092_s25  ;;  %v2826_v18 = vld [vmem:[#allocation7] sm:$0xff]  }
0x1226   :  { %v607_v20 = vpop.permute.xlu1 %606 }
0x1227   :  { %v609_v21 = vadd.f32 %v607_v20, %v599_v19 }
0x1229   :  { %2909 = vtanh.f32 %v609_v21 }
0x1236   :  { %v2910_v22 = vpop.eup %2909 }
0x1237   :  { %612 = vrot.lane.b32.xlu0 %v2910_v22, %s3085_s10 }
0x12a9   :  { %v613_v23 = vpop.permute.xlu0 %612 }
0x12aa   :  { %v615_v24 = vmul.f32 %v2908_v16, %v613_v23  ;;  %v2824_v16 = vld [vmem:[#allocation7 + $0x8] sm:$0xff]  }
0x12ac   :  { %v618_v25 = vpack.c.bf16 %v615_v24, %v615_v24  ;;  %v3328_v24 = vld [vmem:[%s3525_s7] ss:$0 sm:$0xff] }
0x12ae   :  { %620 = vrot.lane.b32.xlu1 %v618_v25, %s3092_s25 }
0x1320   :  { %v621_v26 = vpop.permute.xlu1 %620 }
0x1321   :  { %2647 = vmatmul.mubr.msk.bf16.vlgmr.msra.gmra.mxu1 %vm103_vm1, %v621_v26 }
0x1322   :  { %2660 = vmatprep.mubr.msk.bf16.mxu1 %vm3090_vm0, %v3089_v0  ;;  %2659 = vmatpush3.bf16.msra.mxu1 %v2820_v45 }
0x1323   :  { %2672 = vmatprep.subr.bf16.mxu1 %v3089_v0 }
0x13e1   :  { %v659_v28 = vpop.f32.mrf.mxu1 }
0x13e2   :  { %v665_v29 = vadd.f32 %v2413_v27, %v659_v28 }
0x13e3   :  { %v2648_v30 = vpop.f32.mrf.mxu1 }
0x13e4   :  { %2911 = vtanh.f32 %v665_v29  ;;  %v2415_v34 = vmul.f32 -1.442695, %v665_v29 }
0x13e5   :  { %v662_v31 = vpop.f32.mrf.mxu1 }
0x13e6   :  { %2913 = vpow2.f32 %v2415_v34 }
0x13e7   :  { %v2649_v32 = vpop.f32.mrf.mxu1 }
0x13f1   :  { %v2912_v33 = vpop.eup %2911 }
0x13f2   :  { %675 = vrot.lane.b32.xlu0 %v2912_v33, %s3085_s10 }
0x13f3   :  { %v2914_v35 = vpop.eup %2913 }
0x13f4   :  { %v669_v36 = vadd.f32 1.0, %v2914_v35 }
0x13f6   :  { %2915 = vrcp.f32 %v669_v36 }
0x1403   :  { %v2916_v37 = vpop.eup %2915 }
0x1404   :  { %v673_v41 = vmul.f32 %v2916_v37, %v609_v21 }
0x1464   :  { %v676_v38 = vpop.permute.xlu0 %675 }
0x1465   :  { %v678_v39 = vmul.f32 %v2916_v37, %v676_v38 }
0x1467   :  { %680 = vrot.lane.b32.xlu1 %v678_v39, %s3092_s25 }
0x146b   :  { %695 = vperm.xlu1 %2816, %v693_v40  }
0x14d9   :  { %v681_v42 = vpop.permute.xlu1 %680 }
0x14da   :  { %v683_v43 = vadd.f32 %v681_v42, %v673_v41 }
0x14dc   :  { %2917 = vtanh.f32 %v683_v43 }
0x14e6   :  { %v696_v49 = vpop.permute.xlu1 %695 }
0x14e7   :  { %vm697_vm2 = vcmp.eq.s32.totalorder %v3287_v47, %v696_v49 }
0x14e8   :  { %v2416_v50 = vsel %vm697_vm2, 1.0, %v3089_v0 }
0x14e9   :  { %v2918_v51 = vpop.eup %2917  ;;  %v700_v52 = vpack.c.bf16 %v2416_v50, %v2416_v50 }
0x14ea   :  { %686 = vrot.lane.b32.xlu0 %v2918_v51, %s3085_s10 }
0x14eb   :  { %2661 = vmatmul.mubr.msk.bf16.vlgmr.msra.gmra.mxu1 %vm772_vm3, %v700_v52 }
0x14ec   :  { %2676 = vmatprep.mubr.msk.bf16.mxu1 %vm3090_vm0, %v3089_v0  ;;  %2673 = vmatpush3.bf16.msra.mxu1 %v2824_v16 }
0x14ed   :  { %2674 = vmatprep.subr.bf16.mxu1 %v3089_v0 }
0x14f0   :  { %2675 = vmatpush3.bf16.msra.mxu1 %v2826_v18 }
0x14f1   :  { %2686 = vmatprep.subr.bf16.mxu1 %v3089_v0 }
0x155c   :  { %v687_v53 = vpop.permute.xlu0 %686 }
0x155d   :  { %v689_v2 = vmul.f32 %v2916_v37, %v687_v53 }
0x155f   :  { %v703_v54 = vpack.c.bf16 %v689_v2, %v689_v2 }
0x1561   :  { %709 = vrot.lane.b32.xlu0 %v703_v54, %s3092_s25 }
0x15ab   :  { %v810_v55 = vpop.f32.mrf.mxu1 }
0x15ad   :  { %v2662_v56 = vpop.f32.mrf.mxu1 }
0x15af   :  { %v813_v3 = vpop.f32.mrf.mxu1 }
0x15b1   :  { %v2663_v57 = vpop.f32.mrf.mxu1 }
0x15d3   :  { %v710_v58 = vpop.permute.xlu0 %709 }
0x15d4   :  { %2655 = vmatmul.mubr.msk.bf16.vlgmr.msra.gmra.mxu0 %vm103_vm1, %v710_v58 }
0x15d5   :  { %2668 = vmatprep.mubr.msk.bf16.mxu0 %vm3090_vm0, %v3089_v0  ;;  %2665 = vmatpush3.bf16.msra.mxu0 %v2823_v15 }
0x15d6   :  { %2666 = vmatprep.subr.bf16.mxu0 %v3089_v0 }
0x15d9   :  { %2667 = vmatpush3.bf16.msra.mxu0 %v2825_v17 }
0x15da   :  { %2680 = vmatprep.subr.bf16.mxu0 %v3089_v0 }
0x1694   :  { %v760_v59 = vpop.f32.mrf.mxu0 }
0x1695   :  { %v811_v61 = vadd.f32 %v810_v55, %v760_v59 }
0x1696   :  { %v2656_v62 = vpop.f32.mrf.mxu0 }
0x1697   :  { %v823_v63 = vadd.f32 %v3305_v60, %v811_v61 }
0x1698   :  { %v763_v1 = vpop.f32.mrf.mxu0 }
0x1699   :  { %2919 = vtanh.f32 %v823_v63  ;;  %v2423_v6 = vmul.f32 -1.442695, %v823_v63 }
0x169a   :  { %v2657_v4 = vpop.f32.mrf.mxu0 }
0x169b   :  { %2921 = vpow2.f32 %v2423_v6 }
0x16a6   :  { %v2920_v5 = vpop.eup %2919 }
0x16a7   :  { %833 = vrot.lane.b32.xlu1 %v2920_v5, %s3085_s10 }
0x16a8   :  { %v2922_v7 = vpop.eup %2921 }
0x16a9   :  { %v827_v8 = vadd.f32 1.0, %v2922_v7 }
0x16ab   :  { %2923 = vrcp.f32 %v827_v8 }
0x16b8   :  { %v2924_v9 = vpop.eup %2923 }
0x16b9   :  { %v831_v12 = vmul.f32 %v2924_v9, %v683_v43 }
0x1719   :  { %v834_v10 = vpop.permute.xlu1 %833 }
0x171a   :  { %v836_v11 = vmul.f32 %v2924_v9, %v834_v10  ;;  %v2828_v10 = vld [vmem:[#allocation8 + $0x8] sm:$0xff]  }
0x171c   :  { %838 = vrot.lane.b32.xlu0 %v836_v11, %s3092_s25  ;;  %v2829_v11 = vld [vmem:[#allocation7 + $0x8] sm:$0xff]  }
0x178e   :  { %v839_v13 = vpop.permute.xlu0 %838 }
0x178f   :  { %v3310_v14 = vadd.f32 %v839_v13, %v831_v12  ;;  %v2830_v12 = vld [vmem:[#allocation8] sm:$0xff]   ;;  %v2831_v13 = vld [vmem:[#allocation7] sm:$0xff]  }
0x1791   :  { %2925 = vtanh.f32 %v3310_v14 }
0x179e   :  { %v2926_v19 = vpop.eup %2925 }
0x179f   :  { %844 = vrot.lane.b32.xlu1 %v2926_v19, %s3085_s10 }
0x1811   :  { %v845_v20 = vpop.permute.xlu1 %844 }
0x1812   :  { %v847_v21 = vmul.f32 %v2924_v9, %v845_v20 }
0x1814   :  { %v848_v22 = vpack.c.bf16 %v847_v21, %v847_v21 }
0x1816   :  { %861 = vrot.lane.b32.xlu0 %v848_v22, %s3092_s25 }
0x1888   :  { %v862_v23 = vpop.permute.xlu0 %861 }
0x1889   :  { %2669 = vmatmul.mubr.msk.bf16.vlgmr.msra.gmra.mxu0 %vm103_vm1, %v862_v23  ;;  %2677 = vmatmul.mubr.msk.bf16.vlgmr.msra.gmra.mxu1 %vm103_vm1, %v862_v23 }
0x188a   :  { %2682 = vmatprep.mubr.msk.bf16.mxu0 %vm3090_vm0, %v3089_v0  ;;  %2690 = vmatprep.mubr.msk.bf16.mxu1 %vm3090_vm0, %v3089_v0 }
0x188b   :  { %2681 = vmatpush3.bf16.msra.mxu0 %v2827_v44  ;;  %2687 = vmatpush3.bf16.msra.mxu1 %v2828_v10 }
0x188c   :  { %2694 = vmatprep.subr.bf16.mxu0 %v3089_v0  ;;  %2688 = vmatprep.subr.bf16.mxu1 %v3089_v0 }
0x188f   :  { %2689 = vmatpush3.bf16.msra.mxu1 %v2830_v12 }
0x1890   :  { %2702 = vmatprep.subr.bf16.mxu1 %v3089_v0 }
0x1949   :  { %v912_v25 = vpop.f32.mrf.mxu0  ;;  %v1004_v26 = vpop.f32.mrf.mxu1 }
0x194a   :  { %v913_v27 = vadd.f32 %v3328_v24, %v912_v25 }
0x194b   :  { %v2670_v28 = vpop.f32.mrf.mxu0  ;;  %v2678_v29 = vpop.f32.mrf.mxu1 }
0x194c   :  { %919 = vst [vmem:[#allocation10 + $0x2] sm:$0x3] %v913_v27  ;;  %v921_v30 = vsel %vm920_vm4, %v913_v27, -inf }
0x194d   :  { %922 = vmax.xlane.f32.xlu1 %v921_v30  ;;  %v915_v31 = vpop.f32.mrf.mxu0  ;;  %v1007_v32 = vpop.f32.mrf.mxu1 }
0x194f   :  { %v2671_v33 = vpop.f32.mrf.mxu0  ;;  %v2679_v34 = vpop.f32.mrf.mxu1 }
0x19d6   :  { %v923_v35 = vpop.xlane.xlu1 %922 }
0x19d7   :  { %vm924_vm5 = vcmp.eq.f32.partialorder %v913_v27, %v923_v35 }
0x19d8   :  { %v925_v36 = vsel %vm924_vm5, %v3287_v47, 128 }
0x19d9   :  { %v926_v37 = vsel %vm920_vm4, %v925_v36, 2147483647 }
0x19da   :  { %v928_v38 = vshra.s32 %v926_v37, 16  ;;  %v927_v40 = vand.u32 65535, %v926_v37 }
0x19dc   :  { %v930_v39 = vcvt.s32.f32 %v928_v38  ;;  %v929_v42 = vcvt.s32.f32 %v927_v40 }
0x19de   :  { %931 = vmin.xlane.f32.xlu0 %v930_v39 }
0x1a67   :  { %v932_v41 = vpop.xlane.xlu0 %931 }
0x1a68   :  { %vm933_vm6 = vcmp.eq.f32.partialorder %v930_v39, %v932_v41  ;;  %v938_v45 = vcvt.f32.s32 %v932_v41  ;;  %v2832_v39 = vld [vmem:[#allocation5] sm:$0xff]   ;;  %v2441_v41 = vld [vmem:[%s3520_s2 + $0x4] sm:$0x3] }
0x1a69   :  { %v934_v43 = vsel %vm933_vm6, %v929_v42, inf  ;;  %vm1185_vm11 = vcmp.ge.s32.totalorder %v2441_v41, 0 }
0x1a6a   :  { %935 = vmin.xlane.f32.xlu0 %v934_v43  ;;  %v939_v49 = vshll.u32 %v938_v45, 16 }
0x1af3   :  { %v936_v48 = vpop.xlane.xlu0 %935 }
0x1af4   :  { %v937_v50 = vcvt.f32.s32 %v936_v48 }
0x1af6   :  { %v940_v51 = vadd.s32 %v939_v49, %v937_v50 }
0x1af8   :  { %v944_v52 = vsel %vm943_vm7, %v2428_v46, %v940_v51 }
0x1af9   :  { %946 = vperm.xlu1 %2816, %v944_v52  }
0x1b74   :  { %v947_v53 = vpop.permute.xlu1 %946 }
0x1b75   :  { %vm948_vm8 = vcmp.eq.s32.totalorder %v3287_v47, %v947_v53 }
0x1b76   :  { %v2429_v2 = vsel %vm948_vm8, 1.0, %v3089_v0 }
0x1b77   :  { %v951_v54 = vpack.c.bf16 %v2429_v2, %v2429_v2 }
0x1b79   :  { %2683 = vmatmul.mubr.msk.bf16.vlgmr.msra.gmra.mxu0 %vm772_vm3, %v951_v54 }
0x1b7a   :  { %2698 = vmatprep.mubr.msk.bf16.mxu0 %vm3090_vm0, %v3089_v0  ;;  %2695 = vmatpush3.bf16.msra.mxu0 %v2829_v11 }
0x1b7b   :  { %2696 = vmatprep.subr.bf16.mxu0 %v3089_v0 }
0x1b7e   :  { %2697 = vmatpush3.bf16.msra.mxu0 %v2831_v13 }
0x1b7f   :  { %2708 = vmatprep.subr.bf16.mxu0 %v3089_v0 }
0x1c39   :  { %v1053_v55 = vpop.f32.mrf.mxu0 }
0x1c3a   :  { %v1054_v56 = vadd.f32 %v1053_v55, %v1004_v26 }
0x1c3b   :  { %v2684_v3 = vpop.f32.mrf.mxu0 }
0x1c3c   :  { %v1066_v57 = vadd.f32 %v3305_v60, %v1054_v56 }
0x1c3d   :  { %v1056_v58 = vpop.f32.mrf.mxu0 }
0x1c3e   :  { %2927 = vtanh.f32 %v1066_v57  ;;  %v2436_v62 = vmul.f32 -1.442695, %v1066_v57 }
0x1c3f   :  { %v2685_v59 = vpop.f32.mrf.mxu0 }
0x1c40   :  { %2929 = vpow2.f32 %v2436_v62 }
0x1c4b   :  { %v2928_v61 = vpop.eup %2927 }
0x1c4c   :  { %1076 = vrot.lane.b32.xlu0 %v2928_v61, %s3085_s10 }
0x1c4d   :  { %v2930_v63 = vpop.eup %2929 }
0x1c4e   :  { %v1070_v1 = vadd.f32 1.0, %v2930_v63 }
0x1c50   :  { %2931 = vrcp.f32 %v1070_v1 }
0x1c5d   :  { %v2932_v4 = vpop.eup %2931 }
0x1c5e   :  { %v1074_v7 = vmul.f32 %v2932_v4, %v3310_v14 }
0x1cbe   :  { %v1077_v5 = vpop.permute.xlu0 %1076 }
0x1cbf   :  { %v1079_v6 = vmul.f32 %v2932_v4, %v1077_v5  ;;  %v2833_v5 = vld [vmem:[#allocation8 + $0x8] sm:$0xff]  }
0x1cc1   :  { %1081 = vrot.lane.b32.xlu1 %v1079_v6, %s3092_s25  ;;  %v2834_v6 = vld [vmem:[#allocation7 + $0x8] sm:$0xff]  }
0x1d33   :  { %v1082_v8 = vpop.permute.xlu1 %1081 }
0x1d34   :  { %v3347_v9 = vadd.f32 %v1082_v8, %v1074_v7  ;;  %v2835_v7 = vld [vmem:[#allocation8] sm:$0xff]   ;;  %v2836_v8 = vld [vmem:[#allocation7] sm:$0xff]  }
0x1d36   :  { %2933 = vtanh.f32 %v3347_v9 }
0x1d43   :  { %v2934_v14 = vpop.eup %2933 }
0x1d44   :  { %1087 = vrot.lane.b32.xlu1 %v2934_v14, %s3085_s10 }
0x1db6   :  { %v1088_v15 = vpop.permute.xlu1 %1087 }
0x1db7   :  { %v1090_v16 = vmul.f32 %v2932_v4, %v1088_v15 }
0x1db9   :  { %v1091_v17 = vpack.c.bf16 %v1090_v16, %v1090_v16 }
0x1dbb   :  { %1104 = vrot.lane.b32.xlu0 %v1091_v17, %s3092_s25 }
0x1e2d   :  { %v1105_v18 = vpop.permute.xlu0 %1104 }
0x1e2e   :  { %2691 = vmatmul.mubr.msk.bf16.vlgmr.msra.gmra.mxu1 %vm103_vm1, %v1105_v18  ;;  %2699 = vmatmul.mubr.msk.bf16.vlgmr.msra.gmra.mxu0 %vm103_vm1, %v1105_v18 }
0x1e2f   :  { %2704 = vmatprep.mubr.msk.bf16.mxu1 %vm3090_vm0, %v3089_v0  ;;  %2712 = vmatprep.mubr.msk.bf16.mxu0 %vm3090_vm0, %v3089_v0 }
0x1e30   :  { %2703 = vmatpush3.bf16.msra.mxu1 %v2832_v39  ;;  %2709 = vmatpush3.bf16.msra.mxu0 %v2833_v5 }
0x1e31   :  { %2716 = vmatprep.subr.bf16.mxu1 %v3089_v0  ;;  %2710 = vmatprep.subr.bf16.mxu0 %v3089_v0 }
0x1e34   :  { %2711 = vmatpush3.bf16.msra.mxu0 %v2835_v7 }
0x1e35   :  { %2724 = vmatprep.subr.bf16.mxu0 %v3089_v0 }
0x1eee   :  { %v1155_v19 = vpop.f32.mrf.mxu1  ;;  %v1246_v20 = vpop.f32.mrf.mxu0 }
0x1eef   :  { %v1156_v21 = vadd.f32 %v3328_v24, %v1155_v19 }
0x1ef0   :  { %v2692_v22 = vpop.f32.mrf.mxu1  ;;  %v2700_v23 = vpop.f32.mrf.mxu0 }
0x1ef1   :  { %1162 = vst [vmem:[#allocation10 + $0x4] sm:$0x3] %v1156_v21  ;;  %v1163_v25 = vsel %vm920_vm4, %v1156_v21, -inf }
0x1ef2   :  { %v1249_v26 = vpop.f32.mrf.mxu0  ;;  %1164 = vmax.xlane.f32.xlu1 %v1163_v25  ;;  %v1158_v27 = vpop.f32.mrf.mxu1 }
0x1ef4   :  { %v2693_v28 = vpop.f32.mrf.mxu1  ;;  %v2701_v29 = vpop.f32.mrf.mxu0 }
0x1f7b   :  { %v1165_v30 = vpop.xlane.xlu1 %1164 }
0x1f7c   :  { %vm1166_vm9 = vcmp.eq.f32.partialorder %v1156_v21, %v1165_v30 }
0x1f7d   :  { %v1167_v31 = vsel %vm1166_vm9, %v3287_v47, 128 }
0x1f7e   :  { %v1168_v32 = vsel %vm920_vm4, %v1167_v31, 2147483647 }
0x1f7f   :  { %v1170_v33 = vshra.s32 %v1168_v32, 16  ;;  %v1169_v35 = vand.u32 65535, %v1168_v32 }
0x1f81   :  { %v1172_v34 = vcvt.s32.f32 %v1170_v33  ;;  %v1171_v37 = vcvt.s32.f32 %v1169_v35 }
0x1f83   :  { %1173 = vmin.xlane.f32.xlu0 %v1172_v34 }
0x200c   :  { %v1174_v36 = vpop.xlane.xlu0 %1173 }
0x200d   :  { %vm1175_vm10 = vcmp.eq.f32.partialorder %v1172_v34, %v1174_v36  ;;  %v1180_v40 = vcvt.f32.s32 %v1174_v36  ;;  %v2837_v34 = vld [vmem:[#allocation5] sm:$0xff]   ;;  %v2454_v36 = vld [vmem:[%s3520_s2 + $0x6] sm:$0x3] }
0x200e   :  { %v1176_v38 = vsel %vm1175_vm10, %v1171_v37, inf  ;;  %vm1427_vm15 = vcmp.ge.s32.totalorder %v2454_v36, 0 }
0x200f   :  { %1177 = vmin.xlane.f32.xlu0 %v1176_v38  ;;  %v1181_v43 = vshll.u32 %v1180_v40, 16 }
0x2098   :  { %v1178_v42 = vpop.xlane.xlu0 %1177 }
0x2099   :  { %v1179_v44 = vcvt.f32.s32 %v1178_v42 }
0x209b   :  { %v1182_v45 = vadd.s32 %v1181_v43, %v1179_v44 }
0x209d   :  { %v1186_v46 = vsel %vm1185_vm11, %v2441_v41, %v1182_v45 }
0x209e   :  { %1188 = vperm.xlu1 %2816, %v1186_v46  }
0x2119   :  { %v1189_v48 = vpop.permute.xlu1 %1188 }
0x211a   :  { %vm1190_vm12 = vcmp.eq.s32.totalorder %v3287_v47, %v1189_v48 }
0x211b   :  { %v2442_v49 = vsel %vm1190_vm12, 1.0, %v3089_v0 }
0x211c   :  { %v1193_v50 = vpack.c.bf16 %v2442_v49, %v2442_v49 }
0x211e   :  { %2705 = vmatmul.mubr.msk.bf16.vlgmr.msra.gmra.mxu1 %vm772_vm3, %v1193_v50 }
0x211f   :  { %2720 = vmatprep.mubr.msk.bf16.mxu1 %vm3090_vm0, %v3089_v0  ;;  %2717 = vmatpush3.bf16.msra.mxu1 %v2834_v6 }
0x2120   :  { %2718 = vmatprep.subr.bf16.mxu1 %v3089_v0 }
0x2123   :  { %2719 = vmatpush3.bf16.msra.mxu1 %v2836_v8 }
0x2124   :  { %2730 = vmatprep.subr.bf16.mxu1 %v3089_v0 }
0x21de   :  { %v1295_v51 = vpop.f32.mrf.mxu1 }
0x21df   :  { %v1296_v52 = vadd.f32 %v1295_v51, %v1246_v20 }
0x21e0   :  { %v2706_v53 = vpop.f32.mrf.mxu1 }
0x21e1   :  { %v1308_v2 = vadd.f32 %v3305_v60, %v1296_v52 }
0x21e2   :  { %v1298_v54 = vpop.f32.mrf.mxu1 }
0x21e3   :  { %2935 = vtanh.f32 %v1308_v2  ;;  %v2449_v3 = vmul.f32 -1.442695, %v1308_v2 }
0x21e4   :  { %v2707_v55 = vpop.f32.mrf.mxu1 }
0x21e5   :  { %2937 = vpow2.f32 %v2449_v3 }
0x21f0   :  { %v2936_v56 = vpop.eup %2935 }
0x21f1   :  { %1318 = vrot.lane.b32.xlu0 %v2936_v56, %s3085_s10 }
0x21f2   :  { %v2938_v57 = vpop.eup %2937 }
0x21f3   :  { %v1312_v58 = vadd.f32 1.0, %v2938_v57 }
0x21f5   :  { %2939 = vrcp.f32 %v1312_v58 }
0x2202   :  { %v2940_v59 = vpop.eup %2939 }
0x2203   :  { %v1316_v63 = vmul.f32 %v2940_v59, %v3347_v9 }
0x2263   :  { %v1319_v61 = vpop.permute.xlu0 %1318 }
0x2264   :  { %v1321_v62 = vmul.f32 %v2940_v59, %v1319_v61  ;;  %v2838_v61 = vld [vmem:[#allocation8 + $0x8] sm:$0xff]  }
0x2266   :  { %1323 = vrot.lane.b32.xlu1 %v1321_v62, %s3092_s25  ;;  %v2839_v62 = vld [vmem:[#allocation7 + $0x8] sm:$0xff]  }
0x22d8   :  { %v1324_v1 = vpop.permute.xlu1 %1323 }
0x22d9   :  { %v3379_v4 = vadd.f32 %v1324_v1, %v1316_v63  ;;  %v2840_v63 = vld [vmem:[#allocation8] sm:$0xff]   ;;  %v2841_v1 = vld [vmem:[#allocation7] sm:$0xff]  }
0x22db   :  { %2941 = vtanh.f32 %v3379_v4 }
0x22e8   :  { %v2942_v9 = vpop.eup %2941 }
0x22e9   :  { %1329 = vrot.lane.b32.xlu1 %v2942_v9, %s3085_s10 }
0x235b   :  { %v1330_v10 = vpop.permute.xlu1 %1329 }
0x235c   :  { %v1332_v11 = vmul.f32 %v2940_v59, %v1330_v10 }
0x235e   :  { %v1333_v12 = vpack.c.bf16 %v1332_v11, %v1332_v11 }
0x2360   :  { %1346 = vrot.lane.b32.xlu0 %v1333_v12, %s3092_s25 }
0x23d2   :  { %v1347_v13 = vpop.permute.xlu0 %1346 }
0x23d3   :  { %2713 = vmatmul.mubr.msk.bf16.vlgmr.msra.gmra.mxu0 %vm103_vm1, %v1347_v13  ;;  %2721 = vmatmul.mubr.msk.bf16.vlgmr.msra.gmra.mxu1 %vm103_vm1, %v1347_v13 }
0x23d4   :  { %2726 = vmatprep.mubr.msk.bf16.mxu0 %vm3090_vm0, %v3089_v0  ;;  %2734 = vmatprep.mubr.msk.bf16.mxu1 %vm3090_vm0, %v3089_v0 }
0x23d5   :  { %2725 = vmatpush3.bf16.msra.mxu0 %v2837_v34  ;;  %2731 = vmatpush3.bf16.msra.mxu1 %v2838_v61 }
0x23d6   :  { %2738 = vmatprep.subr.bf16.mxu0 %v3089_v0  ;;  %2732 = vmatprep.subr.bf16.mxu1 %v3089_v0 }
0x23d9   :  { %2733 = vmatpush3.bf16.msra.mxu1 %v2840_v63 }
0x23da   :  { %2746 = vmatprep.subr.bf16.mxu1 %v3089_v0 }
0x2493   :  { %v1397_v14 = vpop.f32.mrf.mxu0  ;;  %v1488_v15 = vpop.f32.mrf.mxu1 }
0x2494   :  { %v1398_v16 = vadd.f32 %v3328_v24, %v1397_v14 }
0x2495   :  { %v2714_v17 = vpop.f32.mrf.mxu0  ;;  %v2722_v18 = vpop.f32.mrf.mxu1 }
0x2496   :  { %1404 = vst [vmem:[#allocation10 + $0x6] sm:$0x3] %v1398_v16  ;;  %v1405_v19 = vsel %vm920_vm4, %v1398_v16, -inf }
0x2497   :  { %1406 = vmax.xlane.f32.xlu1 %v1405_v19  ;;  %v1400_v20 = vpop.f32.mrf.mxu0  ;;  %v1491_v21 = vpop.f32.mrf.mxu1 }
0x2499   :  { %v2715_v22 = vpop.f32.mrf.mxu0  ;;  %v2723_v23 = vpop.f32.mrf.mxu1 }
0x2520   :  { %v1407_v25 = vpop.xlane.xlu1 %1406 }
0x2521   :  { %vm1408_vm13 = vcmp.eq.f32.partialorder %v1398_v16, %v1407_v25 }
0x2522   :  { %v1409_v26 = vsel %vm1408_vm13, %v3287_v47, 128 }
0x2523   :  { %v1410_v27 = vsel %vm920_vm4, %v1409_v26, 2147483647 }
0x2524   :  { %v1412_v28 = vshra.s32 %v1410_v27, 16  ;;  %v1411_v30 = vand.u32 65535, %v1410_v27 }
0x2526   :  { %v1414_v29 = vcvt.s32.f32 %v1412_v28  ;;  %v1413_v32 = vcvt.s32.f32 %v1411_v30 }
0x2528   :  { %1415 = vmin.xlane.f32.xlu0 %v1414_v29 }
0x25b1   :  { %v1416_v31 = vpop.xlane.xlu0 %1415 }
0x25b2   :  { %vm1417_vm14 = vcmp.eq.f32.partialorder %v1414_v29, %v1416_v31  ;;  %v1422_v35 = vcvt.f32.s32 %v1416_v31  ;;  %v2842_v29 = vld [vmem:[#allocation5] sm:$0xff]   ;;  %v2467_v31 = vld [vmem:[%s3520_s2 + $0x8] sm:$0x3] }
0x25b3   :  { %v1418_v33 = vsel %vm1417_vm14, %v1413_v32, inf  ;;  %vm1669_vm7 = vcmp.ge.s32.totalorder %v2467_v31, 0 }
0x25b4   :  { %1419 = vmin.xlane.f32.xlu0 %v1418_v33  ;;  %v1423_v38 = vshll.u32 %v1422_v35, 16 }
0x263d   :  { %v1420_v37 = vpop.xlane.xlu0 %1419 }
0x263e   :  { %v1421_v39 = vcvt.f32.s32 %v1420_v37 }
0x2640   :  { %v1424_v40 = vadd.s32 %v1423_v38, %v1421_v39 }
0x2642   :  { %v1428_v41 = vsel %vm1427_vm15, %v2454_v36, %v1424_v40 }
0x2643   :  { %1430 = vperm.xlu1 %2816, %v1428_v41  }
0x26be   :  { %v1431_v42 = vpop.permute.xlu1 %1430 }
0x26bf   :  { %vm1432_vm2 = vcmp.eq.s32.totalorder %v3287_v47, %v1431_v42 }
0x26c0   :  { %v2455_v43 = vsel %vm1432_vm2, 1.0, %v3089_v0 }
0x26c1   :  { %v1435_v44 = vpack.c.bf16 %v2455_v43, %v2455_v43 }
0x26c3   :  { %2727 = vmatmul.mubr.msk.bf16.vlgmr.msra.gmra.mxu0 %vm772_vm3, %v1435_v44 }
0x26c4   :  { %2742 = vmatprep.mubr.msk.bf16.mxu0 %vm3090_vm0, %v3089_v0  ;;  %2739 = vmatpush3.bf16.msra.mxu0 %v2839_v62 }
0x26c5   :  { %2740 = vmatprep.subr.bf16.mxu0 %v3089_v0 }
0x26c8   :  { %2741 = vmatpush3.bf16.msra.mxu0 %v2841_v1 }
0x26c9   :  { %2752 = vmatprep.subr.bf16.mxu0 %v3089_v0 }
0x2783   :  { %v1537_v45 = vpop.f32.mrf.mxu0 }
0x2784   :  { %v1538_v46 = vadd.f32 %v1537_v45, %v1488_v15 }
0x2785   :  { %v2728_v48 = vpop.f32.mrf.mxu0 }
0x2786   :  { %v1550_v49 = vadd.f32 %v3305_v60, %v1538_v46 }
0x2787   :  { %v1540_v50 = vpop.f32.mrf.mxu0 }
0x2788   :  { %2943 = vtanh.f32 %v1550_v49  ;;  %v2462_v53 = vmul.f32 -1.442695, %v1550_v49 }
0x2789   :  { %v2729_v51 = vpop.f32.mrf.mxu0 }
0x278a   :  { %2945 = vpow2.f32 %v2462_v53 }
0x2795   :  { %v2944_v52 = vpop.eup %2943 }
0x2796   :  { %1560 = vrot.lane.b32.xlu0 %v2944_v52, %s3085_s10 }
0x2797   :  { %v2946_v2 = vpop.eup %2945 }
0x2798   :  { %v1554_v54 = vadd.f32 1.0, %v2946_v2 }
0x279a   :  { %2947 = vrcp.f32 %v1554_v54 }
0x27a7   :  { %v2948_v55 = vpop.eup %2947 }
0x27a8   :  { %v1558_v57 = vmul.f32 %v2948_v55, %v3379_v4 }
0x2808   :  { %v1561_v56 = vpop.permute.xlu0 %1560 }
0x2809   :  { %v1563_v3 = vmul.f32 %v2948_v55, %v1561_v56  ;;  %v2843_v56 = vld [vmem:[#allocation8 + $0x8] sm:$0xff]  }
0x280b   :  { %1565 = vrot.lane.b32.xlu1 %v1563_v3, %s3092_s25  ;;  %v2844_v3 = vld [vmem:[#allocation7 + $0x8] sm:$0xff]  }
0x287d   :  { %v1566_v58 = vpop.permute.xlu1 %1565 }
0x287e   :  { %v3411_v59 = vadd.f32 %v1566_v58, %v1558_v57  ;;  %v2845_v57 = vld [vmem:[#allocation8] sm:$0xff]   ;;  %v2846_v58 = vld [vmem:[#allocation7] sm:$0xff]  }
0x2880   :  { %2949 = vtanh.f32 %v3411_v59 }
0x288d   :  { %v2950_v4 = vpop.eup %2949 }
0x288e   :  { %1571 = vrot.lane.b32.xlu1 %v2950_v4, %s3085_s10 }
0x2900   :  { %v1572_v5 = vpop.permute.xlu1 %1571 }
0x2901   :  { %v1574_v6 = vmul.f32 %v2948_v55, %v1572_v5 }
0x2903   :  { %v1575_v7 = vpack.c.bf16 %v1574_v6, %v1574_v6 }
0x2905   :  { %1588 = vrot.lane.b32.xlu0 %v1575_v7, %s3092_s25 }
0x2977   :  { %v1589_v8 = vpop.permute.xlu0 %1588 }
0x2978   :  { %2735 = vmatmul.mubr.msk.bf16.vlgmr.msra.gmra.mxu1 %vm103_vm1, %v1589_v8  ;;  %2743 = vmatmul.mubr.msk.bf16.vlgmr.msra.gmra.mxu0 %vm103_vm1, %v1589_v8 }
0x2979   :  { %2748 = vmatprep.mubr.msk.bf16.mxu1 %vm3090_vm0, %v3089_v0  ;;  %2756 = vmatprep.mubr.msk.bf16.mxu0 %vm3090_vm0, %v3089_v0 }
0x297a   :  { %2747 = vmatpush3.bf16.msra.mxu1 %v2842_v29  ;;  %2753 = vmatpush3.bf16.msra.mxu0 %v2843_v56 }
0x297b   :  { %2760 = vmatprep.subr.bf16.mxu1 %v3089_v0  ;;  %2754 = vmatprep.subr.bf16.mxu0 %v3089_v0 }
0x297e   :  { %2755 = vmatpush3.bf16.msra.mxu0 %v2845_v57 }
0x297f   :  { %2768 = vmatprep.subr.bf16.mxu0 %v3089_v0 }
0x2a38   :  { %v1639_v9 = vpop.f32.mrf.mxu1  ;;  %v1730_v10 = vpop.f32.mrf.mxu0 }
0x2a39   :  { %v1640_v11 = vadd.f32 %v3328_v24, %v1639_v9 }
0x2a3a   :  { %v2736_v12 = vpop.f32.mrf.mxu1  ;;  %v2744_v13 = vpop.f32.mrf.mxu0 }
0x2a3b   :  { %1646 = vst [vmem:[#allocation10 + $0x8] sm:$0x3] %v1640_v11  ;;  %v1647_v14 = vsel %vm920_vm4, %v1640_v11, -inf }
0x2a3c   :  { %v1733_v15 = vpop.f32.mrf.mxu0  ;;  %1648 = vmax.xlane.f32.xlu1 %v1647_v14  ;;  %v1642_v16 = vpop.f32.mrf.mxu1 }
0x2a3e   :  { %v2737_v17 = vpop.f32.mrf.mxu1  ;;  %v2745_v18 = vpop.f32.mrf.mxu0 }
0x2ac5   :  { %v1649_v19 = vpop.xlane.xlu1 %1648 }
0x2ac6   :  { %vm1650_vm5 = vcmp.eq.f32.partialorder %v1640_v11, %v1649_v19 }
0x2ac7   :  { %v1651_v20 = vsel %vm1650_vm5, %v3287_v47, 128 }
0x2ac8   :  { %v1652_v21 = vsel %vm920_vm4, %v1651_v20, 2147483647 }
0x2ac9   :  { %v1654_v22 = vshra.s32 %v1652_v21, 16  ;;  %v1653_v25 = vand.u32 65535, %v1652_v21 }
0x2acb   :  { %v1656_v23 = vcvt.s32.f32 %v1654_v22  ;;  %v1655_v27 = vcvt.s32.f32 %v1653_v25 }
0x2acd   :  { %1657 = vmin.xlane.f32.xlu0 %v1656_v23 }
0x2b56   :  { %v1658_v26 = vpop.xlane.xlu0 %1657 }
0x2b57   :  { %vm1659_vm6 = vcmp.eq.f32.partialorder %v1656_v23, %v1658_v26  ;;  %v1664_v30 = vcvt.f32.s32 %v1658_v26  ;;  %v2847_v23 = vld [vmem:[#allocation5] sm:$0xff]   ;;  %v2480_v26 = vld [vmem:[%s3520_s2 + $0xa] sm:$0x3] }
0x2b58   :  { %v1660_v28 = vsel %vm1659_vm6, %v1655_v27, inf  ;;  %vm1911_vm11 = vcmp.ge.s32.totalorder %v2480_v26, 0 }
0x2b59   :  { %1661 = vmin.xlane.f32.xlu0 %v1660_v28  ;;  %v1665_v33 = vshll.u32 %v1664_v30, 16 }
0x2be2   :  { %v1662_v32 = vpop.xlane.xlu0 %1661 }
0x2be3   :  { %v1663_v34 = vcvt.f32.s32 %v1662_v32 }
0x2be5   :  { %v1666_v35 = vadd.s32 %v1665_v33, %v1663_v34 }
0x2be7   :  { %v1670_v36 = vsel %vm1669_vm7, %v2467_v31, %v1666_v35 }
0x2be8   :  { %1672 = vperm.xlu1 %2816, %v1670_v36  }
0x2c63   :  { %v1673_v37 = vpop.permute.xlu1 %1672 }
0x2c64   :  { %vm1674_vm8 = vcmp.eq.s32.totalorder %v3287_v47, %v1673_v37 }
0x2c65   :  { %v2468_v38 = vsel %vm1674_vm8, 1.0, %v3089_v0 }
0x2c66   :  { %v1677_v39 = vpack.c.bf16 %v2468_v38, %v2468_v38 }
0x2c68   :  { %2749 = vmatmul.mubr.msk.bf16.vlgmr.msra.gmra.mxu1 %vm772_vm3, %v1677_v39 }
0x2c69   :  { %2764 = vmatprep.mubr.msk.bf16.mxu1 %vm3090_vm0, %v3089_v0  ;;  %2761 = vmatpush3.bf16.msra.mxu1 %v2844_v3 }
0x2c6a   :  { %2762 = vmatprep.subr.bf16.mxu1 %v3089_v0 }
0x2c6d   :  { %2763 = vmatpush3.bf16.msra.mxu1 %v2846_v58 }
0x2c6e   :  { %2774 = vmatprep.subr.bf16.mxu1 %v3089_v0 }
0x2d28   :  { %v1779_v40 = vpop.f32.mrf.mxu1 }
0x2d29   :  { %v1780_v41 = vadd.f32 %v1779_v40, %v1730_v10 }
0x2d2a   :  { %v2750_v42 = vpop.f32.mrf.mxu1 }
0x2d2b   :  { %v1792_v43 = vadd.f32 %v3305_v60, %v1780_v41 }
0x2d2c   :  { %v1782_v44 = vpop.f32.mrf.mxu1 }
0x2d2d   :  { %2951 = vtanh.f32 %v1792_v43  ;;  %v2475_v48 = vmul.f32 -1.442695, %v1792_v43 }
0x2d2e   :  { %v2751_v45 = vpop.f32.mrf.mxu1 }
0x2d2f   :  { %2953 = vpow2.f32 %v2475_v48 }
0x2d3a   :  { %v2952_v46 = vpop.eup %2951 }
0x2d3b   :  { %1802 = vrot.lane.b32.xlu0 %v2952_v46, %s3085_s10 }
0x2d3c   :  { %v2954_v49 = vpop.eup %2953 }
0x2d3d   :  { %v1796_v50 = vadd.f32 1.0, %v2954_v49 }
0x2d3f   :  { %2955 = vrcp.f32 %v1796_v50 }
0x2d4c   :  { %v2956_v51 = vpop.eup %2955 }
0x2d4d   :  { %v1800_v2 = vmul.f32 %v2956_v51, %v3411_v59 }
0x2dad   :  { %v1803_v52 = vpop.permute.xlu0 %1802 }
0x2dae   :  { %v1805_v53 = vmul.f32 %v2956_v51, %v1803_v52  ;;  %v2849_v52 = vld [vmem:[#allocation7 + $0x8] sm:$0xff]  }
0x2db0   :  { %1807 = vrot.lane.b32.xlu1 %v1805_v53, %s3092_s25  ;;  %v2850_v53 = vld [vmem:[#allocation8] sm:$0xff]  }
0x2e22   :  { %v1808_v54 = vpop.permute.xlu1 %1807 }
0x2e23   :  { %v3443_v55 = vadd.f32 %v1808_v54, %v1800_v2  ;;  %v2851_v2 = vld [vmem:[#allocation7] sm:$0xff]  }
0x2e25   :  { %2957 = vtanh.f32 %v3443_v55 }
0x2e32   :  { %v2958_v59 = vpop.eup %2957 }
0x2e33   :  { %1813 = vrot.lane.b32.xlu1 %v2958_v59, %s3085_s10 }
0x2ea5   :  { %v1814_v61 = vpop.permute.xlu1 %1813 }
0x2ea6   :  { %v1816_v62 = vmul.f32 %v2956_v51, %v1814_v61  ;;  %v2848_v51 = vld [vmem:[#allocation8 + $0x8] sm:$0xff]  }
0x2ea8   :  { %v1817_v63 = vpack.c.bf16 %v1816_v62, %v1816_v62 }
0x2eaa   :  { %1830 = vrot.lane.b32.xlu0 %v1817_v63, %s3092_s25 }
0x2f1c   :  { %v1831_v1 = vpop.permute.xlu0 %1830 }
0x2f1d   :  { %2757 = vmatmul.mubr.msk.bf16.vlgmr.msra.gmra.mxu0 %vm103_vm1, %v1831_v1  ;;  %2765 = vmatmul.mubr.msk.bf16.vlgmr.msra.gmra.mxu1 %vm103_vm1, %v1831_v1 }
0x2f1e   :  { %2770 = vmatprep.mubr.msk.bf16.mxu0 %vm3090_vm0, %v3089_v0  ;;  %2778 = vmatprep.mubr.msk.bf16.mxu1 %vm3090_vm0, %v3089_v0 }
0x2f1f   :  { %2769 = vmatpush3.bf16.msra.mxu0 %v2847_v23  ;;  %2775 = vmatpush3.bf16.msra.mxu1 %v2848_v51 }
0x2f20   :  { %2782 = vmatprep.subr.bf16.mxu0 %v3089_v0  ;;  %2776 = vmatprep.subr.bf16.mxu1 %v3089_v0 }
0x2f23   :  { %2777 = vmatpush3.bf16.msra.mxu1 %v2850_v53 }
0x2f24   :  { %2790 = vmatprep.subr.bf16.mxu1 %v3089_v0 }
0x2fdd   :  { %v1881_v4 = vpop.f32.mrf.mxu0  ;;  %v1972_v5 = vpop.f32.mrf.mxu1 }
0x2fde   :  { %v1882_v6 = vadd.f32 %v3328_v24, %v1881_v4 }
0x2fdf   :  { %v2758_v7 = vpop.f32.mrf.mxu0  ;;  %v2766_v8 = vpop.f32.mrf.mxu1 }
0x2fe0   :  { %1888 = vst [vmem:[#allocation10 + $0xa] sm:$0x3] %v1882_v6  ;;  %v1889_v9 = vsel %vm920_vm4, %v1882_v6, -inf }
0x2fe1   :  { %1890 = vmax.xlane.f32.xlu1 %v1889_v9  ;;  %v1884_v10 = vpop.f32.mrf.mxu0  ;;  %v1975_v11 = vpop.f32.mrf.mxu1 }
0x2fe3   :  { %v2759_v12 = vpop.f32.mrf.mxu0  ;;  %v2767_v13 = vpop.f32.mrf.mxu1 }
0x306a   :  { %v1891_v14 = vpop.xlane.xlu1 %1890 }
0x306b   :  { %vm1892_vm9 = vcmp.eq.f32.partialorder %v1882_v6, %v1891_v14 }
0x306c   :  { %v1893_v15 = vsel %vm1892_vm9, %v3287_v47, 128 }
0x306d   :  { %v1894_v16 = vsel %vm920_vm4, %v1893_v15, 2147483647 }
0x306e   :  { %v1896_v17 = vshra.s32 %v1894_v16, 16  ;;  %v1895_v19 = vand.u32 65535, %v1894_v16  ;;  %v2852_v16 = vld [vmem:[#allocation5] sm:$0xff]  }
0x3070   :  { %v1898_v18 = vcvt.s32.f32 %v1896_v17  ;;  %v1897_v21 = vcvt.s32.f32 %v1895_v19 }
0x3072   :  { %1899 = vmin.xlane.f32.xlu0 %v1898_v18 }
0x30fb   :  { %v1900_v20 = vpop.xlane.xlu0 %1899 }
0x30fc   :  { %vm1901_vm10 = vcmp.eq.f32.partialorder %v1898_v18, %v1900_v20  ;;  %v1906_v25 = vcvt.f32.s32 %v1900_v20  ;;  %v2493_v18 = vld [vmem:[%s3520_s2 + $0xc] sm:$0x3] }
0x30fd   :  { %v1902_v22 = vsel %vm1901_vm10, %v1897_v21, inf }
0x30fe   :  { %1903 = vmin.xlane.f32.xlu0 %v1902_v22  ;;  %v1907_v28 = vshll.u32 %v1906_v25, 16 }
0x3187   :  { %v1904_v27 = vpop.xlane.xlu0 %1903 }
0x3188   :  { %v1905_v29 = vcvt.f32.s32 %v1904_v27 }
0x318a   :  { %v1908_v30 = vadd.s32 %v1907_v28, %v1905_v29  ;;  %v2500_v29 = vld [vmem:[%s3523_s5] ss:$0 sm:$0xff] }
0x318c   :  { %v1912_v31 = vsel %vm1911_vm11, %v2480_v26, %v1908_v30 }
0x318d   :  { %1914 = vperm.xlu1 %2816, %v1912_v31  }
0x3208   :  { %v1915_v32 = vpop.permute.xlu1 %1914 }
0x3209   :  { %vm1916_vm12 = vcmp.eq.s32.totalorder %v3287_v47, %v1915_v32 }
0x320a   :  { %v2481_v33 = vsel %vm1916_vm12, 1.0, %v3089_v0 }
0x320b   :  { %v1919_v34 = vpack.c.bf16 %v2481_v33, %v2481_v33 }
0x320d   :  { %2771 = vmatmul.mubr.msk.bf16.vlgmr.msra.gmra.mxu0 %vm772_vm3, %v1919_v34 }
0x320e   :  { %2786 = vmatprep.mubr.msk.bf16.mxu0 %vm3090_vm0, %v3089_v0  ;;  %2783 = vmatpush3.bf16.msra.mxu0 %v2849_v52 }
0x320f   :  { %2784 = vmatprep.subr.bf16.mxu0 %v3089_v0 }
0x3212   :  { %2785 = vmatpush3.bf16.msra.mxu0 %v2851_v2 }
0x3213   :  { %2796 = vmatprep.subr.bf16.mxu0 %v3089_v0 }
0x32cd   :  { %v2021_v35 = vpop.f32.mrf.mxu0 }
0x32ce   :  { %v2022_v36 = vadd.f32 %v2021_v35, %v1972_v5 }
0x32cf   :  { %v2772_v37 = vpop.f32.mrf.mxu0 }
0x32d0   :  { %v2034_v38 = vadd.f32 %v3305_v60, %v2022_v36 }
0x32d1   :  { %v2024_v39 = vpop.f32.mrf.mxu0 }
0x32d2   :  { %2959 = vtanh.f32 %v2034_v38  ;;  %v2488_v42 = vmul.f32 -1.442695, %v2034_v38 }
0x32d3   :  { %v2773_v40 = vpop.f32.mrf.mxu0 }
0x32d4   :  { %2961 = vpow2.f32 %v2488_v42 }
0x32df   :  { %v2960_v41 = vpop.eup %2959 }
0x32e0   :  { %2044 = vrot.lane.b32.xlu0 %v2960_v41, %s3085_s10 }
0x32e1   :  { %v2962_v43 = vpop.eup %2961 }
0x32e2   :  { %v2038_v44 = vadd.f32 1.0, %v2962_v43 }
0x32e4   :  { %2963 = vrcp.f32 %v2038_v44  ;;  %v2853_v44 = vld [vmem:[#allocation8 + $0x8] sm:$0xff]  }
0x32f1   :  { %v2964_v45 = vpop.eup %2963 }
0x32f2   :  { %v2042_v49 = vmul.f32 %v2964_v45, %v3443_v55 }
0x3352   :  { %v2045_v46 = vpop.permute.xlu0 %2044 }
0x3353   :  { %v2047_v48 = vmul.f32 %v2964_v45, %v2045_v46 }
0x3355   :  { %2049 = vrot.lane.b32.xlu1 %v2047_v48, %s3092_s25 }
0x33c7   :  { %v2050_v50 = vpop.permute.xlu1 %2049 }
0x33c8   :  { %v3475_v60 = vadd.f32 %v2050_v50, %v2042_v49 }
0x33ca   :  { %2965 = vtanh.f32 %v3475_v60 }
0x33d7   :  { %v2966_v54 = vpop.eup %2965 }
0x33d8   :  { %2055 = vrot.lane.b32.xlu1 %v2966_v54, %s3085_s10 }
0x344a   :  { %v2056_v55 = vpop.permute.xlu1 %2055 }
0x344b   :  { %v2058_v56 = vmul.f32 %v2964_v45, %v2056_v55  ;;  %v2854_v45 = vld [vmem:[#allocation8] sm:$0xff]  }
0x344d   :  { %v2059_v3 = vpack.c.bf16 %v2058_v56, %v2058_v56 }
0x344f   :  { %2072 = vrot.lane.b32.xlu0 %v2059_v3, %s3092_s25 }
0x34c1   :  { %v2073_v57 = vpop.permute.xlu0 %2072 }
0x34c2   :  { %2779 = vmatmul.mubr.msk.bf16.vlgmr.msra.gmra.mxu1 %vm103_vm1, %v2073_v57  ;;  %2787 = vmatmul.mubr.msk.bf16.vlgmr.msra.gmra.mxu0 %vm103_vm1, %v2073_v57 }
0x34c3   :  { %2792 = vmatprep.mubr.msk.bf16.mxu1 %vm3090_vm0, %v3089_v0  ;;  %2800 = vmatprep.mubr.msk.bf16.mxu0 %vm3090_vm0, %v3089_v0 }
0x34c4   :  { %2791 = vmatpush3.bf16.msra.mxu1 %v2852_v16  ;;  %2797 = vmatpush3.bf16.msra.mxu0 %v2853_v44 }
0x34c5   :  { %2798 = vmatprep.subr.bf16.mxu0 %v3089_v0 }
0x34c8   :  { %2799 = vmatpush3.bf16.msra.mxu0 %v2854_v45 }
0x3582   :  { %v2123_v58 = vpop.f32.mrf.mxu1  ;;  %v2214_v59 = vpop.f32.mrf.mxu0 }
0x3583   :  { %v2124_v61 = vadd.f32 %v3328_v24, %v2123_v58 }
0x3584   :  { %v2780_v62 = vpop.f32.mrf.mxu1  ;;  %v2788_v63 = vpop.f32.mrf.mxu0 }
0x3585   :  { %2130 = vst [vmem:[#allocation10 + $0xc] sm:$0x3] %v2124_v61  ;;  %v2131_v1 = vsel %vm920_vm4, %v2124_v61, -inf }
0x3586   :  { %v2217_v4 = vpop.f32.mrf.mxu0  ;;  %2132 = vmax.xlane.f32.xlu1 %v2131_v1  ;;  %v2126_v5 = vpop.f32.mrf.mxu1 }
0x3588   :  { %v2781_v6 = vpop.f32.mrf.mxu1  ;;  %v2789_v7 = vpop.f32.mrf.mxu0 }
0x360f   :  { %v2133_v8 = vpop.xlane.xlu1 %2132 }
0x3610   :  { %vm2134_vm13 = vcmp.eq.f32.partialorder %v2124_v61, %v2133_v8 }
0x3611   :  { %v2135_v9 = vsel %vm2134_vm13, %v3287_v47, 128 }
0x3612   :  { %v2136_v10 = vsel %vm920_vm4, %v2135_v9, 2147483647  ;;  %vm2153_vm4 = vcmp.ge.s32.totalorder %v2493_v18, 0 }
0x3613   :  { %v2138_v11 = vshra.s32 %v2136_v10, 16  ;;  %v2137_v24 = vand.u32 65535, %v2136_v10 }
0x3615   :  { %v2140_v12 = vcvt.s32.f32 %v2138_v11  ;;  %v2139_v14 = vcvt.s32.f32 %v2137_v24 }
0x3617   :  { %2141 = vmin.xlane.f32.xlu0 %v2140_v12 }
0x36a0   :  { %v2142_v13 = vpop.xlane.xlu0 %2141 }
0x36a1   :  { %vm2143_vm0 = vcmp.eq.f32.partialorder %v2140_v12, %v2142_v13  ;;  %v2148_v17 = vcvt.f32.s32 %v2142_v13 }
0x36a2   :  { %v2144_v15 = vsel %vm2143_vm0, %v2139_v14, inf }
0x36a3   :  { %2145 = vmin.xlane.f32.xlu0 %v2144_v15  ;;  %v2149_v20 = vshll.u32 %v2148_v17, 16 }
0x372c   :  { %v2146_v19 = vpop.xlane.xlu0 %2145 }
0x372d   :  { %v2147_v21 = vcvt.f32.s32 %v2146_v19 }
0x372f   :  { %v2150_v22 = vadd.s32 %v2149_v20, %v2147_v21 }
0x3731   :  { %v2154_v23 = vsel %vm2153_vm4, %v2493_v18, %v2150_v22 }
0x3732   :  { %2156 = vperm.xlu1 %2816, %v2154_v23  }
0x37ad   :  { %v2157_v25 = vpop.permute.xlu1 %2156 }
0x37ae   :  { %vm2158_vm14 = vcmp.eq.s32.totalorder %v3287_v47, %v2157_v25 }
0x37af   :  { %v2494_v26 = vsel %vm2158_vm14, 1.0, %v3089_v0 }
0x37b0   :  { %v2161_v27 = vpack.c.bf16 %v2494_v26, %v2494_v26 }
0x37b2   :  { %2793 = vmatmul.mubr.msk.bf16.vlgmr.msra.gmra.mxu1 %vm772_vm3, %v2161_v27 }
0x3872   :  { %v2263_v28 = vpop.f32.mrf.mxu1 }
0x3873   :  { %v2264_v30 = vadd.f32 %v2263_v28, %v2214_v59 }
0x3874   :  { %v2794_v31 = vpop.f32.mrf.mxu1 }
0x3875   :  { %v2276_v32 = vadd.f32 %v2500_v29, %v2264_v30 }
0x3876   :  { %v2266_v33 = vpop.f32.mrf.mxu1 }
0x3877   :  { %2967 = vtanh.f32 %v2276_v32  ;;  %v2501_v47 = vmul.f32 -1.442695, %v2276_v32 }
0x3878   :  { %v2795_v34 = vpop.f32.mrf.mxu1 }
0x3879   :  { %2969 = vpow2.f32 %v2501_v47 }
0x3884   :  { %v2968_v35 = vpop.eup %2967 }
0x3885   :  { %2286 = vrot.lane.b32.xlu0 %v2968_v35, %s3085_s10 }
0x3886   :  { %v2970_v36 = vpop.eup %2969 }
0x3887   :  { %v2280_v37 = vadd.f32 1.0, %v2970_v36 }
0x3889   :  { %2971 = vrcp.f32 %v2280_v37 }
0x3896   :  { %v2972_v38 = vpop.eup %2971 }
0x3897   :  { %v2284_v41 = vmul.f32 %v2972_v38, %v3475_v60  ;;  %v2502_v60 = vld [vmem:[%s3525_s7] ss:$0 sm:$0xff] }
0x38f7   :  { %v2287_v39 = vpop.permute.xlu0 %2286 }
0x38f8   :  { %v2289_v40 = vmul.f32 %v2972_v38, %v2287_v39 }
0x38fa   :  { %2291 = vrot.lane.b32.xlu1 %v2289_v40, %s3092_s25 }
0x396c   :  { %v2292_v42 = vpop.permute.xlu1 %2291 }
0x396d   :  { %v2294_v43 = vadd.f32 %v2292_v42, %v2284_v41 }
0x396f   :  { %2973 = vtanh.f32 %v2294_v43 }
0x397c   :  { %v2974_v46 = vpop.eup %2973 }
0x397d   :  { %2297 = vrot.lane.b32.xlu1 %v2974_v46, %s3085_s10  ;;  %s3055_s10 = scalar_lea.vmem %s2379_s15, 256 }
0x397e   :  { %p3056_p6 = scmp.ne.s32.totalorder %s2379_s15, %s3055_s10  ;;  %p3061_p8 = scmp.lt.s32.totalorder %s3055_s10, %s3055_s10 }
0x3980   :  { %p3062_p9 = por %p3061_p8, %p3060_p7 }
0x3982   :  { %p3063_p10 = pnand %p3062_p9, %p3056_p6 }
0x39ef   :  { %v2298_v48 = vpop.permute.xlu1 %2297 }
0x39f0   :  { %v2300_v49 = vmul.f32 %v2972_v38, %v2298_v48 }
0x39f2   :  { %v2301_v50 = vpack.c.bf16 %v2300_v49, %v2300_v49 }
0x39f4   :  { %2314 = vrot.lane.b32.xlu0 %v2301_v50, %s3092_s25 }
0x3a66   :  { %v2315_v51 = vpop.permute.xlu0 %2314 }
0x3a67   :  { %2801 = vmatmul.mubr.msk.bf16.vlgmr.msra.gmra.mxu0 %vm103_vm1, %v2315_v51 }
0x3b27   :  { %v2365_v52 = vpop.f32.mrf.mxu0 }
0x3b28   :  { %v2366_v0 = vadd.f32 %v2502_v60, %v2365_v52 }
0x3b29   :  { %v2802_v53 = vpop.f32.mrf.mxu0 }
0x3b2a   :  { %2372 = vst [vmem:[#allocation10 + $0xe] sm:$0x3] %v2366_v0 }
0x3b2b   :  { %v2368_v2 = vpop.f32.mrf.mxu0 }
0x3b2c   :  { %3066 = shalt.err (!%p3063_p10)
}
0x3b2d   :  { %s3094_s16 = smov 2   ;;  %v2803_v54 = vpop.f32.mrf.mxu0 }
0x3b2e   :  { %2384 = dma.vmem_to_hbm [thread:$0]  %s2379_s15, 256, %s3526_s8, [#allocation4], %s3092_s25, %s3092_s25, %s3094_s16  }
0x3b2f   :  { %3081 = dma.done.wait [#allocation4], 256  }
0x3b30   :  { %3082 = vsyncadd [#allocation4], 4294967040 }
0x3b31   :  { %2388 = vsyncpa [#allocation3], 1 }
0x3b32   :  { %2389 = vsyncpa [#allocation6], 1 }
0x3b33   :  { %2390 = vsyncpa [#allocation9], 1 }
0x3b34   :  { %2391 = vsyncpa [#allocation4], 1 }

</bundles_post_ra>
